<compile_context>
chip_gen: v5e
topology: v5e:2x2
jax: 0.10.0
libtpu: 0.0.40
codegen_flags: <defaults>
</compile_context>

<pallas_src>
import functools

import jax
import jax.numpy as jnp
from jax.experimental import pallas as pl
from jax.experimental.pallas import tpu as pltpu


# ----------------------------------------------------------------------------- kernels

def _conv_ln_silu_kernel(col_ref, w_ref, b_ref, g_ref, bb_ref, o_ref):
    """y = W @ col + b, then LayerNorm over the whole (Cout, N) per-sample block
    (matches nn.LayerNorm([C, H, W])) and SiLU.  Output is lane-dense (Cout, N)."""
    y = jnp.dot(w_ref[...], col_ref[0], preferred_element_type=jnp.float32)
    y = y + b_ref[...]                                   # bias broadcast over lanes
    # one-pass LN statistics: var = E[y^2] - mu^2  (biased, torch LN convention)
    mu = jnp.mean(y)
    var = jnp.mean(y * y) - mu * mu
    y = (y - mu) * jax.lax.rsqrt(var + 1e-5)
    y = y * g_ref[...] + bb_ref[...]
    y = y * jax.nn.sigmoid(y)                            # SiLU
    o_ref[0] = y.astype(o_ref.dtype)


def _conv_kernel(col_ref, w_ref, b_ref, o_ref):
    """y = W @ col + b (no LN, no activation, no dummy gamma/beta DMAs)."""
    y = jnp.dot(w_ref[...], col_ref[0], preferred_element_type=jnp.float32)
    o_ref[0] = (y + b_ref[...]).astype(o_ref.dtype)


def _fused_latent_kernel(h_ref, eps_ref,
                         enc_w_ref, enc_b_ref,
                         mu_w1_ref, mu_b1_ref, mu_g_ref, mu_bb_ref, mu_w2_ref, mu_b2_ref,
                         lv_w1_ref, lv_b1_ref, lv_g_ref, lv_bb_ref, lv_w2_ref, lv_b2_ref,
                         dec_w_ref, dec_b_ref,
                         d_ref, kl_ref, *, latent_dim):
    """enc 1x1 -> {mu, logvar} heads (1x1 -> LN -> SiLU -> 1x1) -> reparam + KL sum
    -> dec 1x1.  Everything stays in VMEM; only d and a per-sample KL scalar go out."""
    h = h_ref[0]                                                       # (Cin, N) bf16
    pre = jnp.dot(enc_w_ref[...], h, preferred_element_type=jnp.float32)
    pre = pre + enc_b_ref[...]                                         # (2L, N) f32
    pre_mu = pre[:latent_dim]
    pre_lv = pre[latent_dim:]

    def head(x, w1, b1, g, bb, w2, b2):
        y = jnp.dot(w1, x.astype(jnp.bfloat16),
                    preferred_element_type=jnp.float32) + b1           # (E, N)
        mu = jnp.mean(y)
        var = jnp.mean(y * y) - mu * mu                                # one-pass LN
        y = (y - mu) * jax.lax.rsqrt(var + 1e-5) * g + bb
        y = y * jax.nn.sigmoid(y)                                      # SiLU
        return jnp.dot(w2, y.astype(jnp.bfloat16),
                       preferred_element_type=jnp.float32) + b2        # (L, N)

    mean = head(pre_mu, mu_w1_ref[...], mu_b1_ref[...], mu_g_ref[...],
                mu_bb_ref[...], mu_w2_ref[...], mu_b2_ref[...])
    log_var = head(pre_lv, lv_w1_ref[...], lv_b1_ref[...], lv_g_ref[...],
                   lv_bb_ref[...], lv_w2_ref[...], lv_b2_ref[...])

    # reparameterization + per-sample KL channel/spatial sum (reduced fully in-kernel)
    std = jnp.exp(0.5 * log_var)
    z = mean + eps_ref[0] * std
    kl_terms = 1.0 + log_var - mean * mean - jnp.exp(log_var)
    kl_ref[0] = jnp.sum(kl_terms, keepdims=True)                       # (1, 1)

    d = jnp.dot(dec_w_ref[...], z.astype(jnp.bfloat16),
                preferred_element_type=jnp.float32) + dec_b_ref[...]
    d_ref[0] = d.astype(d_ref.dtype)


# ----------------------------------------------------------------------------- wrappers

def pallas_conv(col, w, b, *, gamma=None, beta=None, out_dtype=jnp.float32):
    """col: (B, K, N) bf16, w: (Cout, K) bf16, b: (Cout, 1) f32,
    gamma/beta: (Cout, N) f32 (optional LN+SiLU).  Returns (B, Cout, N)."""
    B, K, N = col.shape
    Cout = w.shape[0]
    if gamma is not None:
        kernel = _conv_ln_silu_kernel
        extra = (gamma, beta)
        extra_specs = [pl.BlockSpec((Cout, N), lambda i: (0, 0)),
                       pl.BlockSpec((Cout, N), lambda i: (0, 0))]
    else:
        kernel = _conv_kernel
        extra = ()
        extra_specs = []
    return pl.pallas_call(
        kernel,
        out_shape=jax.ShapeDtypeStruct((B, Cout, N), out_dtype),
        grid=(B,),
        in_specs=[
            pl.BlockSpec((1, K, N), lambda i: (i, 0, 0)),
            pl.BlockSpec((Cout, K), lambda i: (0, 0)),
            pl.BlockSpec((Cout, 1), lambda i: (0, 0)),
            *extra_specs,
        ],
        out_specs=pl.BlockSpec((1, Cout, N), lambda i: (i, 0, 0)),
        compiler_params=pltpu.CompilerParams(dimension_semantics=("parallel",)),
    )(col, w, b, *extra)


def pallas_fused_latent(h, eps, wp, *, latent_dim):
    """h: (B, Cin, N) bf16, eps: (B, L, N) f32.
    Returns d: (B, Cin, N) bf16 (decoder 1x1 output) and kl_sum: (B, 1, 1) f32."""
    B, Cin, N = h.shape
    L = latent_dim
    E = wp["mu_w1"].shape[0]

    def batched(shape):
        return pl.BlockSpec((1,) + shape, lambda i: (i,) + (0,) * len(shape))

    def full2(shape):
        return pl.BlockSpec(shape, lambda i: (0, 0))

    kernel = functools.partial(_fused_latent_kernel, latent_dim=L)
    return pl.pallas_call(
        kernel,
        out_shape=(
            jax.ShapeDtypeStruct((B, Cin, N), jnp.bfloat16),
            jax.ShapeDtypeStruct((B, 1, 1), jnp.float32),
        ),
        grid=(B,),
        in_specs=[
            batched((Cin, N)),                        # h
            batched((L, N)),                          # eps
            full2((2 * L, Cin)), full2((2 * L, 1)),   # enc 1x1
            full2((E, L)), full2((E, 1)),             # mu w1/b1
            full2((E, N)), full2((E, N)),             # mu LN gamma/beta
            full2((L, E)), full2((L, 1)),             # mu w2/b2
            full2((E, L)), full2((E, 1)),             # lv w1/b1
            full2((E, N)), full2((E, N)),             # lv LN gamma/beta
            full2((L, E)), full2((L, 1)),             # lv w2/b2
            full2((Cin, L)), full2((Cin, 1)),         # dec 1x1
        ],
        out_specs=(
            batched((Cin, N)),
            batched((1, 1)),
        ),
        compiler_params=pltpu.CompilerParams(dimension_semantics=("parallel",)),
    )(h, eps,
      wp["enc_w"], wp["enc_b"],
      wp["mu_w1"], wp["mu_b1"], wp["mu_g"], wp["mu_bb"], wp["mu_w2"], wp["mu_b2"],
      wp["lv_w1"], wp["lv_b1"], wp["lv_g"], wp["lv_bb"], wp["lv_w2"], wp["lv_b2"],
      wp["dec_w"], wp["dec_b"])


# ----------------------------------------------------------------------------- JAX glue

def geo_cyclic_pad(x, p):
    """x: (B, C, H, W). Circular padding in longitude (W); pole wrap in latitude (H):
    rows near each pole are rolled by half the longitude extent and flipped."""
    # TODO(synk): GeoCyclicPadding source was not provided; standard PARADIS-style
    # pole-wrap + circular-longitude padding is assumed here.
    W = x.shape[3]
    top = jnp.flip(jnp.roll(x[:, :, :p, :], W // 2, axis=3), axis=2)
    bot = jnp.flip(jnp.roll(x[:, :, -p:, :], W // 2, axis=3), axis=2)
    x = jnp.concatenate([top, x, bot], axis=2)
    x = jnp.concatenate([x[:, :, :, -p:], x, x[:, :, :, :p]], axis=3)
    return x


def im2col_3x3(xp, H, W):
    """xp: padded (B, C, H+2, W+2) -> (B, 9*C, H*W); K ordered (dy, dx, cin)."""
    B, C = xp.shape[0], xp.shape[1]
    cols = [xp[:, :, dy:dy + H, dx:dx + W].reshape(B, C, H * W)
            for dy in range(3) for dx in range(3)]
    return jnp.concatenate(cols, axis=1)


def _prep_weights(p):
    """Convert torch-layout parameters to the (Cout, K) / (C, N) matmul layout."""
    def c1(w):    # (Cout, Cin, 1, 1) -> (Cout, Cin)
        return w[:, :, 0, 0].astype(jnp.bfloat16)

    def c3(w):    # (Cout, Cin, 3, 3) -> (Cout, 9*Cin), K ordered (dy, dx, cin)
        return jnp.transpose(w, (0, 2, 3, 1)).reshape(w.shape[0], -1).astype(jnp.bfloat16)

    def colb(b):  # (Cout,) -> (Cout, 1)
        return b.reshape(-1, 1).astype(jnp.float32)

    def ln2(g):   # (C, H, W) -> (C, H*W)
        return g.reshape(g.shape[0], -1).astype(jnp.float32)

    return {
        "enc_conv_w": c3(p["enc_conv_w"]), "enc_conv_b": colb(p["enc_conv_b"]),
        "enc_ln_g": ln2(p["enc_ln_g"]), "enc_ln_b": ln2(p["enc_ln_b"]),
        "enc_w": c1(p["enc_1x1_w"]), "enc_b": colb(p["enc_1x1_b"]),
        "mu_w1": c1(p["mu_w1"]), "mu_b1": colb(p["mu_b1"]),
        "mu_g": ln2(p["mu_ln_g"]), "mu_bb": ln2(p["mu_ln_b"]),
        "mu_w2": c1(p["mu_w2"]), "mu_b2": colb(p["mu_b2"]),
        "lv_w1": c1(p["lv_w1"]), "lv_b1": colb(p["lv_b1"]),
        "lv_g": ln2(p["lv_ln_g"]), "lv_bb": ln2(p["lv_ln_b"]),
        "lv_w2": c1(p["lv_w2"]), "lv_b2": colb(p["lv_b2"]),
        "dec_w": c1(p["dec_1x1_w"]), "dec_b": colb(p["dec_1x1_b"]),
        "dec_conv_w": c3(p["dec_conv_w"]), "dec_conv_b": colb(p["dec_conv_b"]),
        "dec_ln_g": ln2(p["dec_ln_g"]), "dec_ln_b": ln2(p["dec_ln_b"]),
        "dec_fin_w": c3(p["dec_fin_w"]), "dec_fin_b": colb(p["dec_fin_b"]),
    }


# ----------------------------------------------------------------------------- model

def init_params(key, dim_in, dim_out, latent_dim, expansion_factor, H, W):
    ks = jax.random.split(key, 10)
    exp_dim = expansion_factor * latent_dim

    def conv_w(k, cout, cin, ksz):
        return jax.random.normal(k, (cout, cin, ksz, ksz), jnp.float32) * 0.1

    def conv_b(cout):
        return jnp.zeros((cout,), jnp.float32)

    p = {}
    # encoder CLPBlock: GeoPad -> Conv3x3(dim_in->dim_in) -> LN([dim_in,H,W]) -> SiLU
    p["enc_conv_w"] = conv_w(ks[0], dim_in, dim_in, 3)
    p["enc_conv_b"] = conv_b(dim_in)
    p["enc_ln_g"] = jnp.ones((dim_in, H, W), jnp.float32)
    p["enc_ln_b"] = jnp.zeros((dim_in, H, W), jnp.float32)
    # encoder Conv1x1(dim_in -> 2*latent)
    p["enc_1x1_w"] = conv_w(ks[1], 2 * latent_dim, dim_in, 1)
    p["enc_1x1_b"] = conv_b(2 * latent_dim)
    # mu branch
    p["mu_w1"] = conv_w(ks[2], exp_dim, latent_dim, 1)
    p["mu_b1"] = conv_b(exp_dim)
    p["mu_ln_g"] = jnp.ones((exp_dim, H, W), jnp.float32)
    p["mu_ln_b"] = jnp.zeros((exp_dim, H, W), jnp.float32)
    p["mu_w2"] = conv_w(ks[3], latent_dim, exp_dim, 1)
    p["mu_b2"] = conv_b(latent_dim)
    # logvar branch
    p["lv_w1"] = conv_w(ks[4], exp_dim, latent_dim, 1)
    p["lv_b1"] = conv_b(exp_dim)
    p["lv_ln_g"] = jnp.ones((exp_dim, H, W), jnp.float32)
    p["lv_ln_b"] = jnp.zeros((exp_dim, H, W), jnp.float32)
    p["lv_w2"] = conv_w(ks[5], latent_dim, exp_dim, 1)
    p["lv_b2"] = conv_b(latent_dim)
    # decoder: Conv1x1(latent->dim_in) -> CLPBlock(dim_in,dim_in) -> GeoPad -> Conv3x3(dim_in->dim_out)
    p["dec_1x1_w"] = conv_w(ks[6], dim_in, latent_dim, 1)
    p["dec_1x1_b"] = conv_b(dim_in)
    p["dec_conv_w"] = conv_w(ks[7], dim_in, dim_in, 3)
    p["dec_conv_b"] = conv_b(dim_in)
    p["dec_ln_g"] = jnp.ones((dim_in, H, W), jnp.float32)
    p["dec_ln_b"] = jnp.zeros((dim_in, H, W), jnp.float32)
    p["dec_fin_w"] = conv_w(ks[8], dim_out, dim_in, 3)
    p["dec_fin_b"] = conv_b(dim_out)
    return p


@functools.partial(jax.jit, static_argnames=("latent_dim",))
def variational_clp_forward(x_nchw, params, eps_key, *, latent_dim):
    x = x_nchw.astype(jnp.float32)
    B, dim_in, H, W = x.shape
    N = H * W
    wp = _prep_weights(params)

    def geo_conv_cols(x_img):   # (B, C, H, W) -> (B, 9C, N) bf16
        xp = geo_cyclic_pad(x_img.astype(jnp.bfloat16), 1)
        return im2col_3x3(xp, H, W)

    # ---- encoder CLP block: geo-pad -> conv3x3 -> LN -> SiLU ----
    h = pallas_conv(geo_conv_cols(x), wp["enc_conv_w"], wp["enc_conv_b"],
                    gamma=wp["enc_ln_g"], beta=wp["enc_ln_b"],
                    out_dtype=jnp.bfloat16)                              # (B, dim_in, N)

    # ---- fused latent: enc 1x1 -> {mu, logvar} heads -> reparam + KL -> dec 1x1 ----
    eps = jax.random.normal(eps_key, (B, latent_dim, N), jnp.float32)
    d, kl_sum = pallas_fused_latent(h, eps, wp, latent_dim=latent_dim)   # (B, dim_in, N)
    # per-sample sum over (channels, spatial) done in-kernel; -0.5 * mean over (B,H,W) here
    kl_loss = -0.5 * jnp.sum(kl_sum) / (B * N)

    # ---- decoder CLP block: geo-pad -> conv3x3 -> LN -> SiLU ----
    g = pallas_conv(geo_conv_cols(d.reshape(B, dim_in, H, W)),
                    wp["dec_conv_w"], wp["dec_conv_b"],
                    gamma=wp["dec_ln_g"], beta=wp["dec_ln_b"],
                    out_dtype=jnp.bfloat16)                              # (B, dim_in, N)

    # ---- final geo-pad -> conv3x3(dim_in -> dim_out) ----
    out = pallas_conv(geo_conv_cols(g.reshape(B, dim_in, H, W)),
                      wp["dec_fin_w"], wp["dec_fin_b"],
                      out_dtype=jnp.float32)                             # (B, dim_out, N)
    dim_out = out.shape[1]
    return out.reshape(B, dim_out, H, W), kl_loss


# ----------------------------------------------------------------------------- main

if __name__ == "__main__":
    B, dim_in, dim_out = 2, 4, 4
    H, W = 16, 16
    latent_dim, expansion_factor = 8, 8

    key = jax.random.PRNGKey(0)
    k_params, k_x, k_eps = jax.random.split(key, 3)

    params = init_params(k_params, dim_in, dim_out, latent_dim, expansion_factor, H, W)
    x = jax.random.normal(k_x, (B, dim_in, H, W), jnp.float32)

    out, kl = variational_clp_forward(x, params, k_eps, latent_dim=latent_dim)
    out, kl = jax.block_until_ready((out, kl))

    assert out.shape == (B, dim_out, H, W), out.shape
    assert kl.shape == (), kl.shape
    assert bool(jnp.all(jnp.isfinite(out))) and bool(jnp.isfinite(kl))
    print("KERNEL_OK")
</pallas_src>

<mosaic_0001>
module attributes {stable_mosaic.version = 11 : i64} {
  func.func @_conv_ln_silu_kernel(%arg0: i32, %arg1: memref<1x36x256xbf16, #tpu.memory_space<vmem>>, %arg2: memref<4x36xbf16, #tpu.memory_space<vmem>>, %arg3: memref<4x1xf32, #tpu.memory_space<vmem>>, %arg4: memref<4x256xf32, #tpu.memory_space<vmem>>, %arg5: memref<4x256xf32, #tpu.memory_space<vmem>>, %arg6: memref<1x4x256xbf16, #tpu.memory_space<vmem>>) attributes {dimension_semantics = [#tpu.dimension_semantics<parallel>], iteration_bounds = array<i64: 2>, scalar_prefetch = 0 : i64, scratch_operands = 0 : i64, tpu.core_type = #tpu.core_type<tc>, window_params = [{transform_indices = @transform_0, window_bounds = array<i64: 1, 36, 256>}, {pipeline_mode = #tpu.pipeline_mode<synchronous>, transform_indices = @transform_1, window_bounds = array<i64: 4, 36>}, {pipeline_mode = #tpu.pipeline_mode<synchronous>, transform_indices = @transform_2, window_bounds = array<i64: 4, 1>}, {pipeline_mode = #tpu.pipeline_mode<synchronous>, transform_indices = @transform_3, window_bounds = array<i64: 4, 256>}, {pipeline_mode = #tpu.pipeline_mode<synchronous>, transform_indices = @transform_4, window_bounds = array<i64: 4, 256>}, {transform_indices = @transform_5, window_bounds = array<i64: 1, 4, 256>}]} {
    %c0 = arith.constant 0 : index
    %c0_0 = arith.constant 0 : index
    %0 = vector.load %arg2[%c0, %c0_0] : memref<4x36xbf16, #tpu.memory_space<vmem>>, vector<4x36xbf16>
    %c0_1 = arith.constant 0 : index
    %c0_2 = arith.constant 0 : index
    %c0_3 = arith.constant 0 : index
    %1 = vector.load %arg1[%c0_1, %c0_2, %c0_3] : memref<1x36x256xbf16, #tpu.memory_space<vmem>>, vector<1x36x256xbf16>
    %2 = vector.shape_cast %1 : vector<1x36x256xbf16> to vector<36x256xbf16>
    %cst = arith.constant dense<0.000000e+00> : vector<4x256xf32>
    %3 = tpu.matmul %0, %2, %cst {dimension_numbers = #tpu.dot_dimension_numbers<[1], [0], [0], [1], [0, 0, 1, 1], [], []>} : vector<4x36xbf16>, vector<36x256xbf16>, vector<4x256xf32> -> vector<4x256xf32>
    %c0_4 = arith.constant 0 : index
    %c0_5 = arith.constant 0 : index
    %4 = vector.load %arg3[%c0_4, %c0_5] : memref<4x1xf32, #tpu.memory_space<vmem>>, vector<4x1xf32>
    %5 = vector.broadcast %4 : vector<4x1xf32> to vector<4x256xf32>
    %6 = arith.addf %3, %5 : vector<4x256xf32>
    %7 = vector.shape_cast %6 : vector<4x256xf32> to vector<1x4x256xf32>
    %cst_6 = arith.constant dense<0.000000e+00> : vector<1xf32>
    %8 = vector.multi_reduction <add>, %7, %cst_6 [1, 2] : vector<1x4x256xf32> to vector<1xf32>
    %9 = vector.shape_cast %8 : vector<1xf32> to vector<1x1x1xf32>
    %10 = vector.extract %9[0, 0, 0] : f32 from vector<1x1x1xf32>
    %cst_7 = arith.constant 1.024000e+03 : f32
    %11 = arith.divf %10, %cst_7 : f32
    %12 = arith.mulf %6, %6 : vector<4x256xf32>
    %13 = vector.shape_cast %12 : vector<4x256xf32> to vector<1x4x256xf32>
    %cst_8 = arith.constant dense<0.000000e+00> : vector<1xf32>
    %14 = vector.multi_reduction <add>, %13, %cst_8 [1, 2] : vector<1x4x256xf32> to vector<1xf32>
    %15 = vector.shape_cast %14 : vector<1xf32> to vector<1x1x1xf32>
    %16 = vector.extract %15[0, 0, 0] : f32 from vector<1x1x1xf32>
    %cst_9 = arith.constant 1.024000e+03 : f32
    %17 = arith.divf %16, %cst_9 : f32
    %18 = arith.mulf %11, %11 : f32
    %19 = arith.subf %17, %18 : f32
    %20 = vector.broadcast %11 : f32 to vector<4x256xf32>
    %21 = arith.subf %6, %20 : vector<4x256xf32>
    %cst_10 = arith.constant 9.99999974E-6 : f32
    %22 = arith.addf %19, %cst_10 : f32
    %23 = math.rsqrt %22 : f32
    %24 = vector.broadcast %23 : f32 to vector<4x256xf32>
    %25 = arith.mulf %21, %24 : vector<4x256xf32>
    %c0_11 = arith.constant 0 : index
    %c0_12 = arith.constant 0 : index
    %26 = vector.load %arg4[%c0_11, %c0_12] : memref<4x256xf32, #tpu.memory_space<vmem>>, vector<4x256xf32>
    %27 = arith.mulf %25, %26 : vector<4x256xf32>
    %c0_13 = arith.constant 0 : index
    %c0_14 = arith.constant 0 : index
    %28 = vector.load %arg5[%c0_13, %c0_14] : memref<4x256xf32, #tpu.memory_space<vmem>>, vector<4x256xf32>
    %29 = arith.addf %27, %28 : vector<4x256xf32>
    %30 = arith.negf %29 : vector<4x256xf32>
    %31 = math.exp %30 : vector<4x256xf32>
    %cst_15 = arith.constant 1.000000e+00 : f32
    %32 = vector.broadcast %cst_15 : f32 to vector<4x256xf32>
    %33 = arith.addf %32, %31 : vector<4x256xf32>
    %34 = arith.divf %32, %33 : vector<4x256xf32>
    %35 = arith.mulf %29, %34 : vector<4x256xf32>
    %36 = arith.truncf %35 : vector<4x256xf32> to vector<4x256xbf16>
    %c0_16 = arith.constant 0 : index
    %c0_17 = arith.constant 0 : index
    %c0_18 = arith.constant 0 : index
    %37 = vector.load %arg6[%c0_16, %c0_17, %c0_18] : memref<1x4x256xbf16, #tpu.memory_space<vmem>>, vector<1x4x256xbf16>
    %38 = vector.shape_cast %37 : vector<1x4x256xbf16> to vector<4x256xbf16>
    %39 = vector.shape_cast %36 : vector<4x256xbf16> to vector<1x4x256xbf16>
    tpu.vector_store %arg6[%c0_16, %c0_17, %c0_18], %39 {strides = array<i32>} : memref<1x4x256xbf16, #tpu.memory_space<vmem>>, vector<1x4x256xbf16>,
    return
  }
  func.func @transform_0(%arg0: i32) -> (i32, i32, i32) {
    %c0_i32 = arith.constant 0 : i32
    %c0_i32_0 = arith.constant 0 : i32
    %c0_i32_1 = arith.constant 0 : i32
    return %arg0, %c0_i32, %c0_i32_0 : i32, i32, i32
  }
  func.func @transform_1(%arg0: i32) -> (i32, i32) {
    %c0_i32 = arith.constant 0 : i32
    %c0_i32_0 = arith.constant 0 : i32
    %c0_i32_1 = arith.constant 0 : i32
    return %c0_i32, %c0_i32_0 : i32, i32
  }
  func.func @transform_2(%arg0: i32) -> (i32, i32) {
    %c0_i32 = arith.constant 0 : i32
    %c0_i32_0 = arith.constant 0 : i32
    %c0_i32_1 = arith.constant 0 : i32
    return %c0_i32, %c0_i32_0 : i32, i32
  }
  func.func @transform_3(%arg0: i32) -> (i32, i32) {
    %c0_i32 = arith.constant 0 : i32
    %c0_i32_0 = arith.constant 0 : i32
    %c0_i32_1 = arith.constant 0 : i32
    return %c0_i32, %c0_i32_0 : i32, i32
  }
  func.func @transform_4(%arg0: i32) -> (i32, i32) {
    %c0_i32 = arith.constant 0 : i32
    %c0_i32_0 = arith.constant 0 : i32
    %c0_i32_1 = arith.constant 0 : i32
    return %c0_i32, %c0_i32_0 : i32, i32
  }
  func.func @transform_5(%arg0: i32) -> (i32, i32, i32) {
    %c0_i32 = arith.constant 0 : i32
    %c0_i32_0 = arith.constant 0 : i32
    %c0_i32_1 = arith.constant 0 : i32
    return %arg0, %c0_i32, %c0_i32_0 : i32, i32, i32
  }
}

module attributes {stable_mosaic.version = 11 : i64} {
  func.func @_fused_latent_kernel(%arg0: i32, %arg1: memref<1x4x256xbf16, #tpu.memory_space<vmem>>, %arg2: memref<1x8x256xf32, #tpu.memory_space<vmem>>, %arg3: memref<16x4xbf16, #tpu.memory_space<vmem>>, %arg4: memref<16x1xf32, #tpu.memory_space<vmem>>, %arg5: memref<64x8xbf16, #tpu.memory_space<vmem>>, %arg6: memref<64x1xf32, #tpu.memory_space<vmem>>, %arg7: memref<64x256xf32, #tpu.memory_space<vmem>>, %arg8: memref<64x256xf32, #tpu.memory_space<vmem>>, %arg9: memref<8x64xbf16, #tpu.memory_space<vmem>>, %arg10: memref<8x1xf32, #tpu.memory_space<vmem>>, %arg11: memref<64x8xbf16, #tpu.memory_space<vmem>>, %arg12: memref<64x1xf32, #tpu.memory_space<vmem>>, %arg13: memref<64x256xf32, #tpu.memory_space<vmem>>, %arg14: memref<64x256xf32, #tpu.memory_space<vmem>>, %arg15: memref<8x64xbf16, #tpu.memory_space<vmem>>, %arg16: memref<8x1xf32, #tpu.memory_space<vmem>>, %arg17: memref<4x8xbf16, #tpu.memory_space<vmem>>, %arg18: memref<4x1xf32, #tpu.memory_space<vmem>>, %arg19: memref<1x4x256xbf16, #tpu.memory_space<vmem>>, %arg20: memref<1x1x1xf32, #tpu.memory_space<vmem>>) attributes {dimension_semantics = [#tpu.dimension_semantics<parallel>], iteration_bounds = array<i64: 2>, scalar_prefetch = 0 : i64, scratch_operands = 0 : i64, tpu.core_type = #tpu.core_type<tc>, window_params = [{transform_indices = @transform_0, window_bounds = array<i64: 1, 4, 256>}, {transform_indices = @transform_1, window_bounds = array<i64: 1, 8, 256>}, {pipeline_mode = #tpu.pipeline_mode<synchronous>, transform_indices = @transform_2, window_bounds = array<i64: 16, 4>}, {pipeline_mode = #tpu.pipeline_mode<synchronous>, transform_indices = @transform_3, window_bounds = array<i64: 16, 1>}, {pipeline_mode = #tpu.pipeline_mode<synchronous>, transform_indices = @transform_4, window_bounds = array<i64: 64, 8>}, {pipeline_mode = #tpu.pipeline_mode<synchronous>, transform_indices = @transform_5, window_bounds = array<i64: 64, 1>}, {pipeline_mode = #tpu.pipeline_mode<synchronous>, transform_indices = @transform_6, window_bounds = array<i64: 64, 256>}, {pipeline_mode = #tpu.pipeline_mode<synchronous>, transform_indices = @transform_7, window_bounds = array<i64: 64, 256>}, {pipeline_mode = #tpu.pipeline_mode<synchronous>, transform_indices = @transform_8, window_bounds = array<i64: 8, 64>}, {pipeline_mode = #tpu.pipeline_mode<synchronous>, transform_indices = @transform_9, window_bounds = array<i64: 8, 1>}, {pipeline_mode = #tpu.pipeline_mode<synchronous>, transform_indices = @transform_10, window_bounds = array<i64: 64, 8>}, {pipeline_mode = #tpu.pipeline_mode<synchronous>, transform_indices = @transform_11, window_bounds = array<i64: 64, 1>}, {pipeline_mode = #tpu.pipeline_mode<synchronous>, transform_indices = @transform_12, window_bounds = array<i64: 64, 256>}, {pipeline_mode = #tpu.pipeline_mode<synchronous>, transform_indices = @transform_13, window_bounds = array<i64: 64, 256>}, {pipeline_mode = #tpu.pipeline_mode<synchronous>, transform_indices = @transform_14, window_bounds = array<i64: 8, 64>}, {pipeline_mode = #tpu.pipeline_mode<synchronous>, transform_indices = @transform_15, window_bounds = array<i64: 8, 1>}, {pipeline_mode = #tpu.pipeline_mode<synchronous>, transform_indices = @transform_16, window_bounds = array<i64: 4, 8>}, {pipeline_mode = #tpu.pipeline_mode<synchronous>, transform_indices = @transform_17, window_bounds = array<i64: 4, 1>}, {transform_indices = @transform_18, window_bounds = array<i64: 1, 4, 256>}, {transform_indices = @transform_19, window_bounds = array<i64: 1, 1, 1>}]} {
    %c0 = arith.constant 0 : index
    %c0_0 = arith.constant 0 : index
    %c0_1 = arith.constant 0 : index
    %0 = vector.load %arg1[%c0, %c0_0, %c0_1] : memref<1x4x256xbf16, #tpu.memory_space<vmem>>, vector<1x4x256xbf16>
    %1 = vector.shape_cast %0 : vector<1x4x256xbf16> to vector<4x256xbf16>
    %c0_2 = arith.constant 0 : index
    %c0_3 = arith.constant 0 : index
    %2 = vector.load %arg3[%c0_2, %c0_3] : memref<16x4xbf16, #tpu.memory_space<vmem>>, vector<16x4xbf16>
    %cst = arith.constant dense<0.000000e+00> : vector<16x256xf32>
    %3 = tpu.matmul %2, %1, %cst {dimension_numbers = #tpu.dot_dimension_numbers<[1], [0], [0], [1], [0, 0, 1, 1], [], []>} : vector<16x4xbf16>, vector<4x256xbf16>, vector<16x256xf32> -> vector<16x256xf32>
    %c0_4 = arith.constant 0 : index
    %c0_5 = arith.constant 0 : index
    %4 = vector.load %arg4[%c0_4, %c0_5] : memref<16x1xf32, #tpu.memory_space<vmem>>, vector<16x1xf32>
    %5 = vector.broadcast %4 : vector<16x1xf32> to vector<16x256xf32>
    %6 = arith.addf %3, %5 : vector<16x256xf32>
    %7 = vector.extract_strided_slice %6 {offsets = [0, 0], sizes = [8, 256], strides = [1, 1]} : vector<16x256xf32> to vector<8x256xf32>
    %8 = vector.extract_strided_slice %6 {offsets = [8, 0], sizes = [8, 256], strides = [1, 1]} : vector<16x256xf32> to vector<8x256xf32>
    %c0_6 = arith.constant 0 : index
    %c0_7 = arith.constant 0 : index
    %9 = vector.load %arg5[%c0_6, %c0_7] : memref<64x8xbf16, #tpu.memory_space<vmem>>, vector<64x8xbf16>
    %c0_8 = arith.constant 0 : index
    %c0_9 = arith.constant 0 : index
    %10 = vector.load %arg6[%c0_8, %c0_9] : memref<64x1xf32, #tpu.memory_space<vmem>>, vector<64x1xf32>
    %c0_10 = arith.constant 0 : index
    %c0_11 = arith.constant 0 : index
    %11 = vector.load %arg7[%c0_10, %c0_11] : memref<64x256xf32, #tpu.memory_space<vmem>>, vector<64x256xf32>
    %c0_12 = arith.constant 0 : index
    %c0_13 = arith.constant 0 : index
    %12 = vector.load %arg8[%c0_12, %c0_13] : memref<64x256xf32, #tpu.memory_space<vmem>>, vector<64x256xf32>
    %c0_14 = arith.constant 0 : index
    %c0_15 = arith.constant 0 : index
    %13 = vector.load %arg9[%c0_14, %c0_15] : memref<8x64xbf16, #tpu.memory_space<vmem>>, vector<8x64xbf16>
    %c0_16 = arith.constant 0 : index
    %c0_17 = arith.constant 0 : index
    %14 = vector.load %arg10[%c0_16, %c0_17] : memref<8x1xf32, #tpu.memory_space<vmem>>, vector<8x1xf32>
    %15 = arith.truncf %7 : vector<8x256xf32> to vector<8x256xbf16>
    %cst_18 = arith.constant dense<0.000000e+00> : vector<64x256xf32>
    %16 = tpu.matmul %9, %15, %cst_18 {dimension_numbers = #tpu.dot_dimension_numbers<[1], [0], [0], [1], [0, 0, 1, 1], [], []>} : vector<64x8xbf16>, vector<8x256xbf16>, vector<64x256xf32> -> vector<64x256xf32>
    %17 = vector.broadcast %10 : vector<64x1xf32> to vector<64x256xf32>
    %18 = arith.addf %16, %17 : vector<64x256xf32>
    %19 = vector.shape_cast %18 : vector<64x256xf32> to vector<1x64x256xf32>
    %cst_19 = arith.constant dense<0.000000e+00> : vector<1xf32>
    %20 = vector.multi_reduction <add>, %19, %cst_19 [1, 2] : vector<1x64x256xf32> to vector<1xf32>
    %21 = vector.shape_cast %20 : vector<1xf32> to vector<1x1x1xf32>
    %22 = vector.extract %21[0, 0, 0] : f32 from vector<1x1x1xf32>
    %cst_20 = arith.constant 1.638400e+04 : f32
    %23 = arith.divf %22, %cst_20 : f32
    %24 = arith.mulf %18, %18 : vector<64x256xf32>
    %25 = vector.shape_cast %24 : vector<64x256xf32> to vector<1x64x256xf32>
    %cst_21 = arith.constant dense<0.000000e+00> : vector<1xf32>
    %26 = vector.multi_reduction <add>, %25, %cst_21 [1, 2] : vector<1x64x256xf32> to vector<1xf32>
    %27 = vector.shape_cast %26 : vector<1xf32> to vector<1x1x1xf32>
    %28 = vector.extract %27[0, 0, 0] : f32 from vector<1x1x1xf32>
    %cst_22 = arith.constant 1.638400e+04 : f32
    %29 = arith.divf %28, %cst_22 : f32
    %30 = arith.mulf %23, %23 : f32
    %31 = arith.subf %29, %30 : f32
    %32 = vector.broadcast %23 : f32 to vector<64x256xf32>
    %33 = arith.subf %18, %32 : vector<64x256xf32>
    %cst_23 = arith.constant 9.99999974E-6 : f32
    %34 = arith.addf %31, %cst_23 : f32
    %35 = math.rsqrt %34 : f32
    %36 = vector.broadcast %35 : f32 to vector<64x256xf32>
    %37 = arith.mulf %33, %36 : vector<64x256xf32>
    %38 = arith.mulf %37, %11 : vector<64x256xf32>
    %39 = arith.addf %38, %12 : vector<64x256xf32>
    %40 = arith.negf %39 : vector<64x256xf32>
    %41 = math.exp %40 : vector<64x256xf32>
    %cst_24 = arith.constant 1.000000e+00 : f32
    %42 = vector.broadcast %cst_24 : f32 to vector<64x256xf32>
    %43 = arith.addf %42, %41 : vector<64x256xf32>
    %44 = arith.divf %42, %43 : vector<64x256xf32>
    %45 = arith.mulf %39, %44 : vector<64x256xf32>
    %46 = arith.truncf %45 : vector<64x256xf32> to vector<64x256xbf16>
    %cst_25 = arith.constant dense<0.000000e+00> : vector<8x256xf32>
    %47 = tpu.matmul %13, %46, %cst_25 {dimension_numbers = #tpu.dot_dimension_numbers<[1], [0], [0], [1], [0, 0, 1, 1], [], []>} : vector<8x64xbf16>, vector<64x256xbf16>, vector<8x256xf32> -> vector<8x256xf32>
    %48 = vector.broadcast %14 : vector<8x1xf32> to vector<8x256xf32>
    %49 = arith.addf %47, %48 : vector<8x256xf32>
    %c0_26 = arith.constant 0 : index
    %c0_27 = arith.constant 0 : index
    %50 = vector.load %arg11[%c0_26, %c0_27] : memref<64x8xbf16, #tpu.memory_space<vmem>>, vector<64x8xbf16>
    %c0_28 = arith.constant 0 : index
    %c0_29 = arith.constant 0 : index
    %51 = vector.load %arg12[%c0_28, %c0_29] : memref<64x1xf32, #tpu.memory_space<vmem>>, vector<64x1xf32>
    %c0_30 = arith.constant 0 : index
    %c0_31 = arith.constant 0 : index
    %52 = vector.load %arg13[%c0_30, %c0_31] : memref<64x256xf32, #tpu.memory_space<vmem>>, vector<64x256xf32>
    %c0_32 = arith.constant 0 : index
    %c0_33 = arith.constant 0 : index
    %53 = vector.load %arg14[%c0_32, %c0_33] : memref<64x256xf32, #tpu.memory_space<vmem>>, vector<64x256xf32>
    %c0_34 = arith.constant 0 : index
    %c0_35 = arith.constant 0 : index
    %54 = vector.load %arg15[%c0_34, %c0_35] : memref<8x64xbf16, #tpu.memory_space<vmem>>, vector<8x64xbf16>
    %c0_36 = arith.constant 0 : index
    %c0_37 = arith.constant 0 : index
    %55 = vector.load %arg16[%c0_36, %c0_37] : memref<8x1xf32, #tpu.memory_space<vmem>>, vector<8x1xf32>
    %56 = arith.truncf %8 : vector<8x256xf32> to vector<8x256xbf16>
    %cst_38 = arith.constant dense<0.000000e+00> : vector<64x256xf32>
    %57 = tpu.matmul %50, %56, %cst_38 {dimension_numbers = #tpu.dot_dimension_numbers<[1], [0], [0], [1], [0, 0, 1, 1], [], []>} : vector<64x8xbf16>, vector<8x256xbf16>, vector<64x256xf32> -> vector<64x256xf32>
    %58 = vector.broadcast %51 : vector<64x1xf32> to vector<64x256xf32>
    %59 = arith.addf %57, %58 : vector<64x256xf32>
    %60 = vector.shape_cast %59 : vector<64x256xf32> to vector<1x64x256xf32>
    %cst_39 = arith.constant dense<0.000000e+00> : vector<1xf32>
    %61 = vector.multi_reduction <add>, %60, %cst_39 [1, 2] : vector<1x64x256xf32> to vector<1xf32>
    %62 = vector.shape_cast %61 : vector<1xf32> to vector<1x1x1xf32>
    %63 = vector.extract %62[0, 0, 0] : f32 from vector<1x1x1xf32>
    %cst_40 = arith.constant 1.638400e+04 : f32
    %64 = arith.divf %63, %cst_40 : f32
    %65 = arith.mulf %59, %59 : vector<64x256xf32>
    %66 = vector.shape_cast %65 : vector<64x256xf32> to vector<1x64x256xf32>
    %cst_41 = arith.constant dense<0.000000e+00> : vector<1xf32>
    %67 = vector.multi_reduction <add>, %66, %cst_41 [1, 2] : vector<1x64x256xf32> to vector<1xf32>
    %68 = vector.shape_cast %67 : vector<1xf32> to vector<1x1x1xf32>
    %69 = vector.extract %68[0, 0, 0] : f32 from vector<1x1x1xf32>
    %cst_42 = arith.constant 1.638400e+04 : f32
    %70 = arith.divf %69, %cst_42 : f32
    %71 = arith.mulf %64, %64 : f32
    %72 = arith.subf %70, %71 : f32
    %73 = vector.broadcast %64 : f32 to vector<64x256xf32>
    %74 = arith.subf %59, %73 : vector<64x256xf32>
    %cst_43 = arith.constant 9.99999974E-6 : f32
    %75 = arith.addf %72, %cst_43 : f32
    %76 = math.rsqrt %75 : f32
    %77 = vector.broadcast %76 : f32 to vector<64x256xf32>
    %78 = arith.mulf %74, %77 : vector<64x256xf32>
    %79 = arith.mulf %78, %52 : vector<64x256xf32>
    %80 = arith.addf %79, %53 : vector<64x256xf32>
    %81 = arith.negf %80 : vector<64x256xf32>
    %82 = math.exp %81 : vector<64x256xf32>
    %cst_44 = arith.constant 1.000000e+00 : f32
    %83 = vector.broadcast %cst_44 : f32 to vector<64x256xf32>
    %84 = arith.addf %83, %82 : vector<64x256xf32>
    %85 = arith.divf %83, %84 : vector<64x256xf32>
    %86 = arith.mulf %80, %85 : vector<64x256xf32>
    %87 = arith.truncf %86 : vector<64x256xf32> to vector<64x256xbf16>
    %cst_45 = arith.constant dense<0.000000e+00> : vector<8x256xf32>
    %88 = tpu.matmul %54, %87, %cst_45 {dimension_numbers = #tpu.dot_dimension_numbers<[1], [0], [0], [1], [0, 0, 1, 1], [], []>} : vector<8x64xbf16>, vector<64x256xbf16>, vector<8x256xf32> -> vector<8x256xf32>
    %89 = vector.broadcast %55 : vector<8x1xf32> to vector<8x256xf32>
    %90 = arith.addf %88, %89 : vector<8x256xf32>
    %cst_46 = arith.constant 5.000000e-01 : f32
    %91 = vector.broadcast %cst_46 : f32 to vector<8x256xf32>
    %92 = arith.mulf %91, %90 : vector<8x256xf32>
    %93 = math.exp %92 : vector<8x256xf32>
    %c0_47 = arith.constant 0 : index
    %c0_48 = arith.constant 0 : index
    %c0_49 = arith.constant 0 : index
    %94 = vector.load %arg2[%c0_47, %c0_48, %c0_49] : memref<1x8x256xf32, #tpu.memory_space<vmem>>, vector<1x8x256xf32>
    %95 = vector.shape_cast %94 : vector<1x8x256xf32> to vector<8x256xf32>
    %96 = arith.mulf %95, %93 : vector<8x256xf32>
    %97 = arith.addf %49, %96 : vector<8x256xf32>
    %cst_50 = arith.constant 1.000000e+00 : f32
    %98 = vector.broadcast %cst_50 : f32 to vector<8x256xf32>
    %99 = arith.addf %98, %90 : vector<8x256xf32>
    %100 = arith.mulf %49, %49 : vector<8x256xf32>
    %101 = arith.subf %99, %100 : vector<8x256xf32>
    %102 = math.exp %90 : vector<8x256xf32>
    %103 = arith.subf %101, %102 : vector<8x256xf32>
    %104 = vector.shape_cast %103 : vector<8x256xf32> to vector<1x8x256xf32>
    %cst_51 = arith.constant dense<0.000000e+00> : vector<1xf32>
    %105 = vector.multi_reduction <add>, %104, %cst_51 [1, 2] : vector<1x8x256xf32> to vector<1xf32>
    %106 = vector.shape_cast %105 : vector<1xf32> to vector<1x1x1xf32>
    %107 = vector.extract %106[0, 0, 0] : f32 from vector<1x1x1xf32>
    %108 = vector.broadcast %107 : f32 to vector<1x1xf32>
    %c0_52 = arith.constant 0 : index
    %c0_53 = arith.constant 0 : index
    %c0_54 = arith.constant 0 : index
    %109 = vector.load %arg20[%c0_52, %c0_53, %c0_54] : memref<1x1x1xf32, #tpu.memory_space<vmem>>, vector<1x1x1xf32>
    %110 = vector.shape_cast %109 : vector<1x1x1xf32> to vector<1x1xf32>
    %111 = vector.shape_cast %108 : vector<1x1xf32> to vector<1x1x1xf32>
    tpu.vector_store %arg20[%c0_52, %c0_53, %c0_54], %111 {strides = array<i32>} : memref<1x1x1xf32, #tpu.memory_space<vmem>>, vector<1x1x1xf32>,
    %c0_55 = arith.constant 0 : index
    %c0_56 = arith.constant 0 : index
    %112 = vector.load %arg17[%c0_55, %c0_56] : memref<4x8xbf16, #tpu.memory_space<vmem>>, vector<4x8xbf16>
    %113 = arith.truncf %97 : vector<8x256xf32> to vector<8x256xbf16>
    %cst_57 = arith.constant dense<0.000000e+00> : vector<4x256xf32>
    %114 = tpu.matmul %112, %113, %cst_57 {dimension_numbers = #tpu.dot_dimension_numbers<[1], [0], [0], [1], [0, 0, 1, 1], [], []>} : vector<4x8xbf16>, vector<8x256xbf16>, vector<4x256xf32> -> vector<4x256xf32>
    %c0_58 = arith.constant 0 : index
    %c0_59 = arith.constant 0 : index
    %115 = vector.load %arg18[%c0_58, %c0_59] : memref<4x1xf32, #tpu.memory_space<vmem>>, vector<4x1xf32>
    %116 = vector.broadcast %115 : vector<4x1xf32> to vector<4x256xf32>
    %117 = arith.addf %114, %116 : vector<4x256xf32>
    %118 = arith.truncf %117 : vector<4x256xf32> to vector<4x256xbf16>
    %c0_60 = arith.constant 0 : index
    %c0_61 = arith.constant 0 : index
    %c0_62 = arith.constant 0 : index
    %119 = vector.load %arg19[%c0_60, %c0_61, %c0_62] : memref<1x4x256xbf16, #tpu.memory_space<vmem>>, vector<1x4x256xbf16>
    %120 = vector.shape_cast %119 : vector<1x4x256xbf16> to vector<4x256xbf16>
    %121 = vector.shape_cast %118 : vector<4x256xbf16> to vector<1x4x256xbf16>
    tpu.vector_store %arg19[%c0_60, %c0_61, %c0_62], %121 {strides = array<i32>} : memref<1x4x256xbf16, #tpu.memory_space<vmem>>, vector<1x4x256xbf16>,
    return
  }
  func.func @transform_0(%arg0: i32) -> (i32, i32, i32) {
    %c0_i32 = arith.constant 0 : i32
    %c0_i32_0 = arith.constant 0 : i32
    %c0_i32_1 = arith.constant 0 : i32
    return %arg0, %c0_i32, %c0_i32_0 : i32, i32, i32
  }
  func.func @transform_1(%arg0: i32) -> (i32, i32, i32) {
    %c0_i32 = arith.constant 0 : i32
    %c0_i32_0 = arith.constant 0 : i32
    %c0_i32_1 = arith.constant 0 : i32
    return %arg0, %c0_i32, %c0_i32_0 : i32, i32, i32
  }
  func.func @transform_2(%arg0: i32) -> (i32, i32) {
    %c0_i32 = arith.constant 0 : i32
    %c0_i32_0 = arith.constant 0 : i32
    %c0_i32_1 = arith.constant 0 : i32
    return %c0_i32, %c0_i32_0 : i32, i32
  }
  func.func @transform_3(%arg0: i32) -> (i32, i32) {
    %c0_i32 = arith.constant 0 : i32
    %c0_i32_0 = arith.constant 0 : i32
    %c0_i32_1 = arith.constant 0 : i32
    return %c0_i32, %c0_i32_0 : i32, i32
  }
  func.func @transform_4(%arg0: i32) -> (i32, i32) {
    %c0_i32 = arith.constant 0 : i32
    %c0_i32_0 = arith.constant 0 : i32
    %c0_i32_1 = arith.constant 0 : i32
    return %c0_i32, %c0_i32_0 : i32, i32
  }
  func.func @transform_5(%arg0: i32) -> (i32, i32) {
    %c0_i32 = arith.constant 0 : i32
    %c0_i32_0 = arith.constant 0 : i32
    %c0_i32_1 = arith.constant 0 : i32
    return %c0_i32, %c0_i32_0 : i32, i32
  }
  func.func @transform_6(%arg0: i32) -> (i32, i32) {
    %c0_i32 = arith.constant 0 : i32
    %c0_i32_0 = arith.constant 0 : i32
    %c0_i32_1 = arith.constant 0 : i32
    return %c0_i32, %c0_i32_0 : i32, i32
  }
  func.func @transform_7(%arg0: i32) -> (i32, i32) {
    %c0_i32 = arith.constant 0 : i32
    %c0_i32_0 = arith.constant 0 : i32
    %c0_i32_1 = arith.constant 0 : i32
    return %c0_i32, %c0_i32_0 : i32, i32
  }
  func.func @transform_8(%arg0: i32) -> (i32, i32) {
    %c0_i32 = arith.constant 0 : i32
    %c0_i32_0 = arith.constant 0 : i32
    %c0_i32_1 = arith.constant 0 : i32
    return %c0_i32, %c0_i32_0 : i32, i32
  }
  func.func @transform_9(%arg0: i32) -> (i32, i32) {
    %c0_i32 = arith.constant 0 : i32
    %c0_i32_0 = arith.constant 0 : i32
    %c0_i32_1 = arith.constant 0 : i32
    return %c0_i32, %c0_i32_0 : i32, i32
  }
  func.func @transform_10(%arg0: i32) -> (i32, i32) {
    %c0_i32 = arith.constant 0 : i32
    %c0_i32_0 = arith.constant 0 : i32
    %c0_i32_1 = arith.constant 0 : i32
    return %c0_i32, %c0_i32_0 : i32, i32
  }
  func.func @transform_11(%arg0: i32) -> (i32, i32) {
    %c0_i32 = arith.constant 0 : i32
    %c0_i32_0 = arith.constant 0 : i32
    %c0_i32_1 = arith.constant 0 : i32
    return %c0_i32, %c0_i32_0 : i32, i32
  }
  func.func @transform_12(%arg0: i32) -> (i32, i32) {
    %c0_i32 = arith.constant 0 : i32
    %c0_i32_0 = arith.constant 0 : i32
    %c0_i32_1 = arith.constant 0 : i32
    return %c0_i32, %c0_i32_0 : i32, i32
  }
  func.func @transform_13(%arg0: i32) -> (i32, i32) {
    %c0_i32 = arith.constant 0 : i32
    %c0_i32_0 = arith.constant 0 : i32
    %c0_i32_1 = arith.constant 0 : i32
    return %c0_i32, %c0_i32_0 : i32, i32
  }
  func.func @transform_14(%arg0: i32) -> (i32, i32) {
    %c0_i32 = arith.constant 0 : i32
    %c0_i32_0 = arith.constant 0 : i32
    %c0_i32_1 = arith.constant 0 : i32
    return %c0_i32, %c0_i32_0 : i32, i32
  }
  func.func @transform_15(%arg0: i32) -> (i32, i32) {
    %c0_i32 = arith.constant 0 : i32
    %c0_i32_0 = arith.constant 0 : i32
    %c0_i32_1 = arith.constant 0 : i32
    return %c0_i32, %c0_i32_0 : i32, i32
  }
  func.func @transform_16(%arg0: i32) -> (i32, i32) {
    %c0_i32 = arith.constant 0 : i32
    %c0_i32_0 = arith.constant 0 : i32
    %c0_i32_1 = arith.constant 0 : i32
    return %c0_i32, %c0_i32_0 : i32, i32
  }
  func.func @transform_17(%arg0: i32) -> (i32, i32) {
    %c0_i32 = arith.constant 0 : i32
    %c0_i32_0 = arith.constant 0 : i32
    %c0_i32_1 = arith.constant 0 : i32
    return %c0_i32, %c0_i32_0 : i32, i32
  }
  func.func @transform_18(%arg0: i32) -> (i32, i32, i32) {
    %c0_i32 = arith.constant 0 : i32
    %c0_i32_0 = arith.constant 0 : i32
    %c0_i32_1 = arith.constant 0 : i32
    return %arg0, %c0_i32, %c0_i32_0 : i32, i32, i32
  }
  func.func @transform_19(%arg0: i32) -> (i32, i32, i32) {
    %c0_i32 = arith.constant 0 : i32
    %c0_i32_0 = arith.constant 0 : i32
    %c0_i32_1 = arith.constant 0 : i32
    return %arg0, %c0_i32, %c0_i32_0 : i32, i32, i32
  }
}

module attributes {stable_mosaic.version = 11 : i64} {
  func.func @_conv_kernel(%arg0: i32, %arg1: memref<1x36x256xbf16, #tpu.memory_space<vmem>>, %arg2: memref<4x36xbf16, #tpu.memory_space<vmem>>, %arg3: memref<4x1xf32, #tpu.memory_space<vmem>>, %arg4: memref<1x4x256xf32, #tpu.memory_space<vmem>>) attributes {dimension_semantics = [#tpu.dimension_semantics<parallel>], iteration_bounds = array<i64: 2>, scalar_prefetch = 0 : i64, scratch_operands = 0 : i64, tpu.core_type = #tpu.core_type<tc>, window_params = [{transform_indices = @transform_0, window_bounds = array<i64: 1, 36, 256>}, {pipeline_mode = #tpu.pipeline_mode<synchronous>, transform_indices = @transform_1, window_bounds = array<i64: 4, 36>}, {pipeline_mode = #tpu.pipeline_mode<synchronous>, transform_indices = @transform_2, window_bounds = array<i64: 4, 1>}, {transform_indices = @transform_3, window_bounds = array<i64: 1, 4, 256>}]} {
    %c0 = arith.constant 0 : index
    %c0_0 = arith.constant 0 : index
    %0 = vector.load %arg2[%c0, %c0_0] : memref<4x36xbf16, #tpu.memory_space<vmem>>, vector<4x36xbf16>
    %c0_1 = arith.constant 0 : index
    %c0_2 = arith.constant 0 : index
    %c0_3 = arith.constant 0 : index
    %1 = vector.load %arg1[%c0_1, %c0_2, %c0_3] : memref<1x36x256xbf16, #tpu.memory_space<vmem>>, vector<1x36x256xbf16>
    %2 = vector.shape_cast %1 : vector<1x36x256xbf16> to vector<36x256xbf16>
    %cst = arith.constant dense<0.000000e+00> : vector<4x256xf32>
    %3 = tpu.matmul %0, %2, %cst {dimension_numbers = #tpu.dot_dimension_numbers<[1], [0], [0], [1], [0, 0, 1, 1], [], []>} : vector<4x36xbf16>, vector<36x256xbf16>, vector<4x256xf32> -> vector<4x256xf32>
    %c0_4 = arith.constant 0 : index
    %c0_5 = arith.constant 0 : index
    %4 = vector.load %arg3[%c0_4, %c0_5] : memref<4x1xf32, #tpu.memory_space<vmem>>, vector<4x1xf32>
    %5 = vector.broadcast %4 : vector<4x1xf32> to vector<4x256xf32>
    %6 = arith.addf %3, %5 : vector<4x256xf32>
    %c0_6 = arith.constant 0 : index
    %c0_7 = arith.constant 0 : index
    %c0_8 = arith.constant 0 : index
    %7 = vector.load %arg4[%c0_6, %c0_7, %c0_8] : memref<1x4x256xf32, #tpu.memory_space<vmem>>, vector<1x4x256xf32>
    %8 = vector.shape_cast %7 : vector<1x4x256xf32> to vector<4x256xf32>
    %9 = vector.shape_cast %6 : vector<4x256xf32> to vector<1x4x256xf32>
    tpu.vector_store %arg4[%c0_6, %c0_7, %c0_8], %9 {strides = array<i32>} : memref<1x4x256xf32, #tpu.memory_space<vmem>>, vector<1x4x256xf32>,
    return
  }
  func.func @transform_0(%arg0: i32) -> (i32, i32, i32) {
    %c0_i32 = arith.constant 0 : i32
    %c0_i32_0 = arith.constant 0 : i32
    %c0_i32_1 = arith.constant 0 : i32
    return %arg0, %c0_i32, %c0_i32_0 : i32, i32, i32
  }
  func.func @transform_1(%arg0: i32) -> (i32, i32) {
    %c0_i32 = arith.constant 0 : i32
    %c0_i32_0 = arith.constant 0 : i32
    %c0_i32_1 = arith.constant 0 : i32
    return %c0_i32, %c0_i32_0 : i32, i32
  }
  func.func @transform_2(%arg0: i32) -> (i32, i32) {
    %c0_i32 = arith.constant 0 : i32
    %c0_i32_0 = arith.constant 0 : i32
    %c0_i32_1 = arith.constant 0 : i32
    return %c0_i32, %c0_i32_0 : i32, i32
  }
  func.func @transform_3(%arg0: i32) -> (i32, i32, i32) {
    %c0_i32 = arith.constant 0 : i32
    %c0_i32_0 = arith.constant 0 : i32
    %c0_i32_1 = arith.constant 0 : i32
    return %arg0, %c0_i32, %c0_i32_0 : i32, i32, i32
  }
}

</mosaic_0001>

<bundles_post_ra>
// kernel: variational_clp_forward.4
= control target key start
LH: loop header
LB: loop body
LE: loop exit
PB: predicated region body
PF: predicated region fallthrough
CT: control target
= control target key end

     0   :  { %s594_s18 = smov 0   ;;  %s642_s0 = inlined_call_operand.vmem [shape: bf16[2,36,256], index: 0, kind: input, shape index: {}]   ;;  %s643_s1 = inlined_call_operand.vmem [shape: bf16[4,36], index: 1, kind: input, shape index: {}]   ;;  %s644_s2 = inlined_call_operand.vmem [shape: f32[4,1], index: 2, kind: input, shape index: {}]   ;;  %s645_s3 = inlined_call_operand.vmem [shape: f32[4,256], index: 3, kind: input, shape index: {}]   ;;  %s646_s4 = inlined_call_operand.vmem [shape: f32[4,256], index: 4, kind: input, shape index: {}]   ;;  %s647_s5 = inlined_call_operand.vmem [shape: bf16[2,4,256], index: 5, kind: output, shape index: {}]  }
   0x1 LB: > { %s487_s19 = sadd.s32 4294967295, %s560_s18   ;;  %p491_p0 = scmp.ge.s32.totalorder %s560_s18, 1  ;;  %s560_s18 = sphi %s594_s18, %s15_s18  }
   0x2   : > { %p187_p1 = scmp.lt.s32.totalorder %s560_s18, 3 }
   0x4   : > { %p188_p2 = pnand %p491_p0, %p187_p1 }
   0x5   : > { %p215_p3 = scmp.lt.s32.totalorder (!%p188_p2), %s487_s19, 1 }
   0x6   : > { %191 = sbr.rel (%p188_p2) target bundleno = 463 (0x1cf), region = 40 }
   0xb   : > { %v562_v0 = vmov 0   ;;  %v232_v1 = vld [vmem:[%s644_s2] sm:$0xf]  ;;  %s649_s19 = smov (!%p215_p3, %s487_s19), 1  ;;  %vm267_vm0 = vcmask 1041408   ;;  %vm263_vm1 = vcmask 293888  }
   0xc   : > { %541 = vset.pattern.permute.xlu0 %v562_v0  ;;  %s522_s22 = smul.u32 40, %s649_s19  ;;  %v226_v21 = vld [vmem:[%s643_s1] sm:$0x3]  ;;  %vm300_vm2 = vcmask 1043456   ;;  %v563_v37 = vmov 1024.0   ;;  %s517_s16 = sshll.u32 %s649_s19, 2 }
   0xd   : > { %235 = vperm.xlu0 %541, %v232_v1   ;;  %542 = vrcp.f32 %v563_v37  ;;  %s224_s21 = scalar_lea.vmem %s647_s5, %s517_s16 }
   0xe   : > { %s219_s25 = scalar_lea.vmem %s642_s0, %s522_s22 }
   0xf   : > { %v231_v2 = vld [vmem:[%s219_s25 + $0x20] sm:$0x33]  ;;  %v505_v5 = vld [vmem:[%s219_s25 + $0x10] sm:$0xf]  ;;  %v521_v8 = vld [vmem:[%s219_s25 + $0x14] sm:$0xf0] }
  0x10   : > { %v251_v3 = vunpack.c.l.b16 %v231_v2  ;;  %v252_v4 = vunpack.c.h.b16 %v231_v2  ;;  %v520_v9 = vld [vmem:[%s219_s25 + $0x14] sm:$0xf]  ;;  %v507_v10 = vld [vmem:[%s219_s25 + $0x18] sm:$0xf0]  ;;  %v506_v13 = vor.u32 %v521_v8, %v505_v5  ;;  %v497_v15 = vld [vmem:[%s219_s25] sm:$0xf] }
  0x11   : > { %v510_v14 = vor.u32 %v520_v9, %v507_v10  ;;  %v519_v16 = vld [vmem:[%s219_s25 + $0x4] sm:$0xf0]  ;;  %v518_v17 = vld [vmem:[%s219_s25 + $0x4] sm:$0xf]  ;;  %v499_v18 = vld [vmem:[%s219_s25 + $0x8] sm:$0xf0] }
  0x12   : > { %v257_v6 = vpack.c.b16 %v251_v3, %v251_v3  ;;  %v258_v7 = vpack.c.b16 %v252_v4, %v252_v4  ;;  %v498_v19 = vor.u32 %v519_v16, %v497_v15  ;;  %v502_v20 = vor.u32 %v518_v17, %v499_v18  ;;  %v366_v2 = vld [vmem:[%s645_s3] sm:$0xff] }
  0x13   : > { %v543_v38 = vpop.eup %542  ;;  %368 = vst [vmem:[#allocation1] ss:$2 sm:$0xff] %v366_v2  ;;  %v375_v5 = vld [vmem:[%s646_s4] sm:$0xff] }
  0x14   : > { %v269_v11 = vsel %vm267_vm0, %v257_v6, 0  ;;  %v272_v12 = vsel %vm267_vm0, %v258_v7, 0  ;;  %v314_v39 = vmul.f32 1024.0, %v543_v38  ;;  %vm318_vm3 = vweird.f32 %v543_v38 }
  0x15   : > { %279 = vmatpush.bf16.msra.mxu0 %v269_v11  ;;  %292 = vmatpush.bf16.msra.mxu1 %v272_v12 }
  0x16   : > { %v315_v40 = vsub.f32 1.0, %v314_v39 }
  0x18   : > { %v316_v46 = vmul.f32 %v543_v38, %v315_v40 }
  0x19   : > { %280 = vmatpush.bf16.msra.mxu0 %v506_v13  ;;  %293 = vmatpush.bf16.msra.mxu1 %v510_v14 }
  0x1a   : > { %v317_v51 = vadd.f32 %v543_v38, %v316_v46  ;;  %v369_v3 = vld.sshfl [vmem:[#allocation1] sm:$0xff pattern:$0x75316420]  ;;  %v370_v4 = vld.sshfl [vmem:[#allocation1 + $0x8] sm:$0xff pattern:$0x75316420] }
  0x1b   : > { %377 = vst [vmem:[#allocation1] ss:$2 sm:$0xff] %v375_v5 }
  0x1c   : > { %v319_v55 = vsel %vm318_vm3, %v543_v38, %v317_v51 }
  0x1d   : > { %281 = vmatpush.bf16.msra.mxu0 %v498_v19  ;;  %294 = vmatpush.bf16.msra.mxu1 %v502_v20 }
  0x20   : > { %511 = vmatmul.msk.bf16.vlgmr.msra.gmra.mxu0 %vm263_vm1, %v226_v21  ;;  %512 = vmatmul.msk.bf16.vlgmr.msra.gmra.mxu1 %vm263_vm1, %v226_v21 }
  0x22   : > { %v378_v12 = vld.sshfl [vmem:[#allocation1] sm:$0xff pattern:$0x75316420]  ;;  %v379_v13 = vld.sshfl [vmem:[#allocation1 + $0x8] sm:$0xff pattern:$0x75316420] }
  0x7f   : > { %v236_v22 = vpop.permute.xlu0 %235 }
  0x9d   : > { %v283_v23 = vpop.f32.mrf.mxu0  ;;  %v296_v24 = vpop.f32.mrf.mxu1 }
  0x9e   : > { %v616_v25 = vadd.f32 %v283_v23, %v236_v22  ;;  %v618_v26 = vadd.f32 %v296_v24, %v236_v22 }
  0xa0   : > { %v301_v27 = vsel %vm300_vm2, %v616_v25, 0.0  ;;  %v302_v28 = vsel %vm300_vm2, %v618_v26, 0.0  ;;  %v322_v29 = vmul.f32 %v616_v25, %v616_v25  ;;  %v323_v30 = vmul.f32 %v618_v26, %v618_v26 }
  0xa1   : > { %v303_v31 = vadd.f32 %v302_v28, %v301_v27 }
  0xa2   : > { %v324_v32 = vsel %vm300_vm2, %v322_v29, 0.0  ;;  %v325_v33 = vsel %vm300_vm2, %v323_v30, 0.0 }
  0xa3   : > { %304 = vadd.xlane.f32.xlu0 %v303_v31  ;;  %v326_v34 = vadd.f32 %v325_v33, %v324_v32 }
  0xa5   : > { %v285_v35 = vpop.f32.mrf.mxu0  ;;  %v298_v36 = vpop.f32.mrf.mxu1  ;;  %327 = vadd.xlane.f32.xlu1 %v326_v34 }
 0x116   : > { %v305_v41 = vpop.xlane.xlu0 %304 }
 0x117   : > { %v306_v42 = vrot.slane %v305_v41, 4 }
 0x118   : > { %v328_v43 = vpop.xlane.xlu1 %327 }
 0x119   : > { %v307_v44 = vadd.f32 %v306_v42, %v305_v41  ;;  %v329_v45 = vrot.slane %v328_v43, 4 }
 0x11b   : > { %v308_v47 = vrot.slane %v307_v44, 2  ;;  %v330_v48 = vadd.f32 %v329_v45, %v328_v43 }
 0x11d   : > { %v331_v49 = vrot.slane %v330_v48, 2  ;;  %v309_v50 = vadd.f32 %v308_v47, %v307_v44 }
 0x11f   : > { %v332_v52 = vadd.f32 %v331_v49, %v330_v48  ;;  %v310_v53 = vrot.slane %v309_v50, 1 }
 0x121   : > { %v311_v54 = vadd.f32 %v310_v53, %v309_v50  ;;  %v333_v56 = vrot.slane %v332_v52, 1 }
 0x123   : > { %523 = vpush %v311_v54  ;;  %v334_v57 = vadd.f32 %v333_v56, %v332_v52 }
 0x124   : > { %525 = vpush %v319_v55 }
 0x125   : > { %527 = vpush %v334_v57 }
 0x154   : > { %s524_s28 = spop %523 }
 0x155   : > { %s526_s29 = spop %525 }
 0x156   : > { %s321_s30 = smul.f32 %s526_s29, %s524_s28  ;;  %s528_s6 = spop %527 }
 0x157   : > { %s344_s7 = smul.f32 %s528_s6, %s526_s29 }
 0x158   : > { %s345_s8 = smul.f32 %s321_s30, %s321_s30  ;;  %v347_v6 = vstv %s321_s30 }
 0x159   : > { %v348_v7 = vsub.f32 %v616_v25, %v347_v6  ;;  %v349_v8 = vsub.f32 %v618_v26, %v347_v6 }
 0x15a   : > { %s346_s9 = ssub.f32 %s344_s7, %s345_s8 }
 0x15c   : > { %s350_s10 = sadd.f32 1e-05, %s346_s9 }
 0x15e   : > { %v351_v58 = vstv %s350_s10 }
 0x15f   : > { %544 = vrsqrt.f32 %v351_v58  ;;  %vm358_vm5 = vweird.f32 %v351_v58 }
 0x165   : > { %v545_v59 = vpop.eup %544 }
 0x166   : > { %v353_v60 = vmul.f32 %v545_v59, %v351_v58  ;;  %vm359_vm4 = vweird.f32 %v545_v59 }
 0x167   : > { %vm360_vm6 = vmor %vm358_vm5, %vm359_vm4 }
 0x168   : > { %v354_v61 = vmul.f32 %v545_v59, %v353_v60 }
 0x16a   : > { %v355_v62 = vmul.f32 0.5, %v354_v61 }
 0x16c   : > { %v356_v63 = vsub.f32 1.5, %v355_v62 }
 0x16e   : > { %v357_v0 = vmul.f32 %v545_v59, %v356_v63 }
 0x170   : > { %v361_v1 = vsel %vm360_vm6, %v545_v59, %v357_v0 }
 0x171   : > { %529 = vpush %v361_v1 }
 0x1a2   : > { %s530_s15 = spop %529 }
 0x1a3   : > { %v363_v9 = vstv %s530_s15 }
 0x1a4   : > { %v364_v10 = vmul.f32 %v363_v9, %v348_v7  ;;  %v365_v11 = vmul.f32 %v363_v9, %v349_v8 }
 0x1a6   : > { %v373_v14 = vmul.f32 %v369_v3, %v364_v10  ;;  %v374_v15 = vmul.f32 %v370_v4, %v365_v11 }
 0x1a8   : > { %v382_v16 = vadd.f32 %v378_v12, %v373_v14  ;;  %v383_v17 = vadd.f32 %v379_v13, %v374_v15 }
 0x1aa   : > { %v513_v18 = vmul.f32 -1.442695, %v382_v16  ;;  %v514_v19 = vmul.f32 -1.442695, %v383_v17 }
 0x1ac   : > { %546 = vpow2.f32 %v513_v18 }
 0x1ad   : > { %548 = vpow2.f32 %v514_v19 }
 0x1b2   : > { %v547_v20 = vpop.eup %546 }
 0x1b3   : > { %v549_v21 = vpop.eup %548  ;;  %v390_v22 = vadd.f32 1.0, %v547_v20 }
 0x1b4   : > { %v391_v23 = vadd.f32 1.0, %v549_v21 }
 0x1b5   : > { %550 = vrcp.f32 %v390_v22  ;;  %v403_v29 = vand.u32 2147483648, %v390_v22  ;;  %v401_v32 = vand.u32 2147483647, %v390_v22  ;;  %vm397_vm9 = vweird.f32 %v390_v22 }
 0x1b6   : > { %552 = vrcp.f32 %v391_v23  ;;  %v418_v33 = vand.u32 2147483648, %v391_v23  ;;  %v416_v35 = vand.u32 2147483647, %v391_v23  ;;  %vm412_vm11 = vweird.f32 %v391_v23 }
 0x1b7   : > { %v404_v37 = vor.u32 1.1754944e-38, %v403_v29  ;;  %vm402_vm12 = vcmp.eq.f32.partialorder %v401_v32, 8.507059e+37 }
 0x1b8   : > { %v419_v40 = vor.u32 1.1754944e-38, %v418_v33  ;;  %vm417_vm14 = vcmp.eq.f32.partialorder %v416_v35, 8.507059e+37 }
 0x1bb   : > { %v551_v24 = vpop.eup %550 }
 0x1bc   : > { %v553_v25 = vpop.eup %552  ;;  %v393_v26 = vmul.f32 %v551_v24, %v390_v22  ;;  %vm398_vm7 = vweird.f32 %v551_v24 }
 0x1bd   : > { %v408_v27 = vmul.f32 %v553_v25, %v391_v23  ;;  %vm413_vm8 = vweird.f32 %v553_v25  ;;  %vm399_vm10 = vmor %vm397_vm9, %vm398_vm7 }
 0x1be   : > { %v394_v28 = vsub.f32 1.0, %v393_v26  ;;  %vm414_vm13 = vmor %vm412_vm11, %vm413_vm8 }
 0x1bf   : > { %v409_v30 = vsub.f32 1.0, %v408_v27 }
 0x1c0   : > { %v395_v31 = vmul.f32 %v551_v24, %v394_v28 }
 0x1c1   : > { %v410_v34 = vmul.f32 %v553_v25, %v409_v30 }
 0x1c2   : > { %v396_v36 = vadd.f32 %v551_v24, %v395_v31 }
 0x1c3   : > { %v411_v38 = vadd.f32 %v553_v25, %v410_v34 }
 0x1c4   : > { %v400_v39 = vsel %vm399_vm10, %v551_v24, %v396_v36 }
 0x1c5   : > { %v405_v41 = vsel %vm402_vm12, %v404_v37, %v400_v39  ;;  %v415_v42 = vsel %vm414_vm13, %v553_v25, %v411_v38 }
 0x1c6   : > { %v420_v43 = vsel %vm417_vm14, %v419_v40, %v415_v42  ;;  %v422_v44 = vmul.f32 %v405_v41, %v382_v16 }
 0x1c7   : > { %v423_v45 = vmul.f32 %v420_v43, %v383_v17 }
 0x1c9   : > { %v424_v46 = vpack.c.bf16 %v423_v45, %v422_v44 }
 0x1cb   : > { %v426_v47 = vrot.slane %v424_v46, 2 }
 0x1cd   : > { %v429_v48 = vsel %vm267_vm0, %v424_v46, %v426_v47 }
 0x1ce   : > { %431 = vst [vmem:[%s224_s21] sm:$0xf] %v429_v48 }
 0x1cf PF: > { %s15_s18 = sadd.s32 1, %s560_s18  }
 0x1d0   : > { %p12_p4 = scmp.ge.s32.totalorder %s15_s18, 4  }
 0x1d2   :  { %14 = sbr.rel (!%p12_p4) target bundleno = 1 (0x1), region = 70 }

// kernel: variational_clp_forward.5
= control target key start
LH: loop header
LB: loop body
LE: loop exit
PB: predicated region body
PF: predicated region fallthrough
CT: control target
= control target key end

     0   :  { %s3820_s0 = inlined_call_operand.vmem [shape: bf16[2,4,256], index: 0, kind: input, shape index: {}]   ;;  %s3821_s1 = inlined_call_operand.vmem [shape: f32[2,8,256], index: 1, kind: input, shape index: {}]   ;;  %s3822_s2 = inlined_call_operand.vmem [shape: bf16[16,4], index: 2, kind: input, shape index: {}]   ;;  %s3823_s3 = inlined_call_operand.vmem [shape: f32[16,1], index: 3, kind: input, shape index: {}]   ;;  %s3824_s4 = inlined_call_operand.vmem [shape: bf16[64,8], index: 4, kind: input, shape index: {}]   ;;  %s3825_s5 = inlined_call_operand.vmem [shape: f32[64,1], index: 5, kind: input, shape index: {}]   ;;  %s3826_s6 = inlined_call_operand.vmem [shape: f32[64,256], index: 6, kind: input, shape index: {}]   ;;  %s3827_s7 = inlined_call_operand.vmem [shape: f32[64,256], index: 7, kind: input, shape index: {}]   ;;  %s3828_s8 = inlined_call_operand.vmem [shape: bf16[8,64], index: 8, kind: input, shape index: {}]   ;;  %s3829_s9 = inlined_call_operand.vmem [shape: f32[8,1], index: 9, kind: input, shape index: {}]   ;;  %s3830_s10 = inlined_call_operand.vmem [shape: bf16[64,8], index: 10, kind: input, shape index: {}]   ;;  %s3831_s11 = inlined_call_operand.vmem [shape: f32[64,1], index: 11, kind: input, shape index: {}]   ;;  %s3832_s12 = inlined_call_operand.vmem [shape: f32[64,256], index: 12, kind: input, shape index: {}]   ;;  %s3833_s13 = inlined_call_operand.vmem [shape: f32[64,256], index: 13, kind: input, shape index: {}]   ;;  %s3834_s14 = inlined_call_operand.vmem [shape: bf16[8,64], index: 14, kind: input, shape index: {}]   ;;  %s3835_s15 = inlined_call_operand.vmem [shape: f32[8,1], index: 15, kind: input, shape index: {}]   ;;  %s3836_s16 = inlined_call_operand.vmem [shape: bf16[4,8], index: 16, kind: input, shape index: {}]   ;;  %s3837_s17 = inlined_call_operand.vmem [shape: f32[4,1], index: 17, kind: input, shape index: {}]   ;;  %s3838_s18 = inlined_call_operand.vmem [shape: bf16[2,4,256], index: 18, kind: output, shape index: {0}]   ;;  %s3839_s19 = inlined_call_operand.vmem [shape: f32[2,1,1], index: 19, kind: output, shape index: {1}]  }
   0x1   :  { %3847 = sst [smem:[#allocation2_spill]] %s3820_s0  ;;  %s2702_s0 = smov 0  }
   0x2   :  { %3848 = sst [smem:[#allocation3_spill]] %s3821_s1 }
   0x3   :  { %3849 = sst [smem:[#allocation4_spill]] %s3822_s2 }
   0x4   :  { %3850 = sst [smem:[#allocation5_spill]] %s3823_s3 }
   0x5 LB: > { %s2304_s30 = sadd.s32 4294967295, %s2598_s0   ;;  %p2308_p0 = scmp.ge.s32.totalorder %s2598_s0, 1  ;;  %s2598_s0 = sphi %s2702_s0, %s30_s0  }
   0x6   : > { %p550_p1 = scmp.lt.s32.totalorder %s2598_s0, 3 }
   0x8   : > { %p551_p2 = pnand %p2308_p0, %p550_p1 }
   0x9   : > { %s3851_s1 = sld [smem:[#allocation5_spill]] (!%p551_p2)  ;;  %p614_p3 = scmp.lt.s32.totalorder (!%p551_p2), %s2304_s30, 1 }
   0xa   : > { %554 = sbr.rel (%p551_p2) target bundleno = 1600 (0x640), region = 92  ;;  %s3852_s3 = sld [smem:[#allocation2_spill]] (!%p551_p2) }
   0xb   : > { %s3853_s2 = sld [smem:[#allocation4_spill]] (!%p551_p2) }
   0xf   : > { %v636_v0 = vld [vmem:[%s3851_s1] sm:$0xff]  ;;  %v2600_v1 = vmov 0   ;;  %v705_v2 = vld [vmem:[%s3825_s5 + $0x18] sm:$0xff]  ;;  %s3898_s30 = smov (!%p614_p3, %s2304_s30), 1  ;;  %vm3843_vm0 = vcmask 1041408   ;;  %v707_v11 = vld [vmem:[%s3825_s5 + $0x28] sm:$0xff] }
  0x10   : > { %2447 = vset.pattern.permute.xlu0 %v2600_v1  ;;  %2449 = vset.pattern.permute.xlu2 %v2600_v1  ;;  %s3841_s23 = sshll.u32 %s3898_s30, 2  ;;  %v702_v4 = vld [vmem:[%s3825_s5] sm:$0xff]  ;;  %v709_v12 = vld [vmem:[%s3825_s5 + $0x38] sm:$0xff]  ;;  %vm657_vm1 = vcmask 31744   ;;  %v637_v13 = vld [vmem:[%s3851_s1 + $0x8] sm:$0xff]  ;;  %vm3845_vm2 = vcmask 1043456  }
  0x11   : > { %640 = vperm.xlu0 %2447, %v636_v0   ;;  %763 = vperm.xlu2 %2449, %v705_v2   ;;  %s618_s26 = scalar_lea.vmem %s3852_s3, %s3841_s23  ;;  %v706_v5 = vld [vmem:[%s3825_s5 + $0x20] sm:$0xff]  ;;  %v703_v14 = vld [vmem:[%s3825_s5 + $0x8] sm:$0xff]  ;;  %vm3844_vm3 = vcmask 64512   ;;  %v704_v25 = vld [vmem:[%s3825_s5 + $0x10] sm:$0xff] }
  0x12   : > { %2448 = vset.pattern.permute.xlu1 %v2600_v1  ;;  %v633_v3 = vld [vmem:[%s618_s26] sm:$0xf]  ;;  %v708_v27 = vld [vmem:[%s3825_s5 + $0x30] sm:$0xff]  ;;  %v1419_v28 = vld [vmem:[%s3831_s11 + $0x8] sm:$0xff] }
  0x13   : > { %654 = vst [vmem:[#allocation1] ss:$4 sm:$0xff] %v633_v3  ;;  %v2412_v10 = vld [vmem:[%s3853_s2] sm:$0xff]  ;;  %753 = vperm.xlu1 %2448, %v703_v14   ;;  %v2414_v29 = vld [vmem:[%s3824_s4 + $0x8] sm:$0xff]  ;;  %v1420_v30 = vld [vmem:[%s3831_s11 + $0x10] sm:$0xff] }
  0x14   : > { %v2413_v24 = vld [vmem:[%s3824_s4] sm:$0xff]  ;;  %v1421_v31 = vld [vmem:[%s3831_s11 + $0x18] sm:$0xff]  ;;  %v2415_v32 = vld [vmem:[%s3824_s4 + $0x10] sm:$0xff] }
  0x15   : > { %v1418_v26 = vld [vmem:[%s3831_s11] sm:$0xff]  ;;  %v1425_v34 = vld [vmem:[%s3831_s11 + $0x38] sm:$0xff] }
  0x16   : > { %v1422_v33 = vld [vmem:[%s3831_s11 + $0x20] sm:$0xff]  ;;  %v2416_v35 = vld [vmem:[%s3824_s4 + $0x18] sm:$0xff] }
  0x19   : > { %748 = vperm.xlu0 %2447, %v702_v4   ;;  %768 = vperm.xlu2 %2449, %v706_v5  }
  0x1a   : > { %v655_v6 = vld.sshfl [vmem:[#allocation1] sm:$0xff pattern:$0x73625140]  ;;  %v656_v7 = vld.sshfl [vmem:[#allocation1 + $0x8] sm:$0xff pattern:$0x73625140] }
  0x1b   : > { %v662_v8 = vsel %vm3843_vm0, %v655_v6, 0  ;;  %v664_v9 = vsel %vm3843_vm0, %v656_v7, 0  ;;  %758 = vperm.xlu1 %2448, %v704_v25  }
  0x1c   : > { %673 = vmatpush.bf16.msra.mxu0 %v662_v8  ;;  %687 = vmatpush.bf16.msra.mxu1 %v664_v9 }
  0x1f   : > { %2319 = vmatmul.msk.bf16.vlgmr.msra.gmra.mxu0 %vm657_vm1, %v2412_v10  ;;  %2320 = vmatmul.msk.bf16.vlgmr.msra.gmra.mxu1 %vm657_vm1, %v2412_v10 }
  0x21   : > { %773 = vperm.xlu0 %2447, %v707_v11   ;;  %783 = vperm.xlu2 %2449, %v709_v12  }
  0x23   : > { %778 = vperm.xlu1 %2448, %v708_v27  }
  0x29   : > { %645 = vperm.xlu2 %2449, %v637_v13  }
  0x31   : > { %1464 = vperm.xlu2 %2449, %v1418_v26  }
  0x39   : > { %1469 = vperm.xlu2 %2449, %v1419_v28  }
  0x41   : > { %1474 = vperm.xlu2 %2449, %v1420_v30  }
  0x49   : > { %1479 = vperm.xlu2 %2449, %v1421_v31  }
  0x51   : > { %1484 = vperm.xlu2 %2449, %v1422_v33  }
  0x59   : > { %1499 = vperm.xlu2 %2449, %v1425_v34  }
  0x6b   : > { %v764_v52 = vpop.permute.xlu2 %763 }
  0x73   : > { %v769_v9 = vpop.permute.xlu2 %768 }
  0x83   : > { %v641_v15 = vpop.permute.xlu0 %640 }
  0x85   : > { %v754_v40 = vpop.permute.xlu1 %753 }
  0x8b   : > { %v749_v41 = vpop.permute.xlu0 %748 }
  0x8d   : > { %v759_v49 = vpop.permute.xlu1 %758 }
  0x9c   : > { %v675_v16 = vpop.f32.mrf.mxu0  ;;  %v689_v17 = vpop.f32.mrf.mxu1 }
  0x9d   : > { %v676_v18 = vadd.f32 %v675_v16, %v641_v15  ;;  %v690_v19 = vadd.f32 %v689_v17, %v641_v15  ;;  %v774_v15 = vpop.permute.xlu0 %773 }
  0x9f   : > { %v744_v20 = vpack.c.bf16 %v676_v18, %v676_v18  ;;  %v745_v21 = vpack.c.bf16 %v690_v19, %v690_v19 }
  0xa1   : > { %v821_v22 = vsel %vm3845_vm2, %v744_v20, 0  ;;  %v824_v23 = vsel %vm3845_vm2, %v745_v21, 0 }
  0xa2   : > { %833 = vmatpush.bf16.msra.mxu2 %v821_v22  ;;  %862 = vmatpush.bf16.msra.mxu3 %v824_v23 }
  0xa5   : > { %2337 = vmatmul.msk.bf16.vlgmr.msra.gmra.mxu2 %vm3844_vm3, %v2413_v24  ;;  %2341 = vmatmul.msk.bf16.vlgmr.msra.gmra.mxu3 %vm3844_vm3, %v2413_v24 }
  0xb5   : > { %2338 = vmatmul.msk.bf16.gmra.mxu2 %vm3844_vm3, %v2414_v29  ;;  %2342 = vmatmul.msk.bf16.gmra.mxu3 %vm3844_vm3, %v2414_v29  ;;  %v779_v29 = vpop.permute.xlu1 %778 }
  0xc5   : > { %2339 = vmatmul.msk.bf16.gmra.mxu2 %vm3844_vm3, %v2415_v32  ;;  %2343 = vmatmul.msk.bf16.gmra.mxu3 %vm3844_vm3, %v2415_v32 }
  0xd5   : > { %2340 = vmatmul.msk.bf16.gmra.mxu2 %vm3844_vm3, %v2416_v35  ;;  %2344 = vmatmul.msk.bf16.gmra.mxu3 %vm3844_vm3, %v2416_v35 }
 0x128   : > { %v835_v36 = vpop.f32.mrf.mxu2  ;;  %v864_v37 = vpop.f32.mrf.mxu3 }
 0x129   : > { %v2793_v42 = vadd.f32 %v835_v36, %v749_v41  ;;  %v2795_v43 = vadd.f32 %v864_v37, %v749_v41 }
 0x12b   : > { %v917_v47 = vmul.f32 %v2793_v42, %v2793_v42  ;;  %v918_v48 = vmul.f32 %v2795_v43, %v2795_v43  ;;  %v884_v50 = vadd.f32 %v2795_v43, %v2793_v42 }
 0x12d   : > { %v933_v53 = vadd.f32 %v918_v48, %v917_v47 }
 0x130   : > { %v837_v38 = vpop.f32.mrf.mxu2  ;;  %v866_v39 = vpop.f32.mrf.mxu3 }
 0x131   : > { %v2797_v46 = vadd.f32 %v837_v38, %v754_v40  ;;  %v2808_v55 = vadd.f32 %v866_v39, %v754_v40 }
 0x133   : > { %v919_v51 = vmul.f32 %v2797_v46, %v2797_v46  ;;  %v885_v54 = vadd.f32 %v884_v50, %v2797_v46  ;;  %v920_v61 = vmul.f32 %v2808_v55, %v2808_v55 }
 0x135   : > { %v934_v59 = vadd.f32 %v933_v53, %v919_v51  ;;  %v886_v60 = vadd.f32 %v885_v54, %v2808_v55 }
 0x137   : > { %v935_v0 = vadd.f32 %v934_v59, %v920_v61 }
 0x138   : > { %v840_v44 = vpop.f32.mrf.mxu2  ;;  %v869_v45 = vpop.f32.mrf.mxu3 }
 0x139   : > { %v2810_v56 = vadd.f32 %v840_v44, %v759_v49  ;;  %v2817_v63 = vadd.f32 %v869_v45, %v759_v49  ;;  %v784_v45 = vpop.permute.xlu2 %783 }
 0x13b   : > { %v921_v62 = vmul.f32 %v2810_v56, %v2810_v56  ;;  %v887_v1 = vadd.f32 %v886_v60, %v2810_v56  ;;  %v922_v4 = vmul.f32 %v2817_v63, %v2817_v63 }
 0x13d   : > { %v936_v3 = vadd.f32 %v935_v0, %v921_v62  ;;  %v888_v7 = vadd.f32 %v887_v1, %v2817_v63  ;;  %v1423_v0 = vld [vmem:[%s3831_s11 + $0x28] sm:$0xff]  ;;  %v1424_v1 = vld [vmem:[%s3831_s11 + $0x30] sm:$0xff] }
 0x13f   : > { %v937_v10 = vadd.f32 %v936_v3, %v922_v4  ;;  %v1459_v3 = vld [vmem:[%s3835_s15] sm:$0xff] }
 0x140   : > { %v842_v57 = vpop.f32.mrf.mxu2  ;;  %v871_v58 = vpop.f32.mrf.mxu3  ;;  %v743_v4 = vld [vmem:[%s3829_s9] sm:$0xff] }
 0x141   : > { %v2820_v2 = vadd.f32 %v842_v57, %v764_v52  ;;  %v2828_v12 = vadd.f32 %v871_v58, %v764_v52 }
 0x143   : > { %v923_v8 = vmul.f32 %v2820_v2, %v2820_v2  ;;  %v889_v11 = vadd.f32 %v888_v7, %v2820_v2  ;;  %v924_v17 = vmul.f32 %v2828_v12, %v2828_v12 }
 0x145   : > { %v938_v14 = vadd.f32 %v937_v10, %v923_v8  ;;  %v890_v16 = vadd.f32 %v889_v11, %v2828_v12 }
 0x147   : > { %v939_v22 = vadd.f32 %v938_v14, %v924_v17 }
 0x148   : > { %v845_v5 = vpop.f32.mrf.mxu2  ;;  %v874_v6 = vpop.f32.mrf.mxu3 }
 0x149   : > { %v2830_v13 = vadd.f32 %v845_v5, %v769_v9  ;;  %v2837_v19 = vadd.f32 %v874_v6, %v769_v9  ;;  %v2601_v5 = vmov 16384.0  }
 0x14a   : > { %2450 = vrcp.f32 %v2601_v5 }
 0x14b   : > { %v925_v18 = vmul.f32 %v2830_v13, %v2830_v13  ;;  %v891_v23 = vadd.f32 %v890_v16, %v2830_v13  ;;  %v926_v26 = vmul.f32 %v2837_v19, %v2837_v19 }
 0x14d   : > { %v940_v25 = vadd.f32 %v939_v22, %v925_v18  ;;  %v892_v27 = vadd.f32 %v891_v23, %v2837_v19 }
 0x14f   : > { %v941_v30 = vadd.f32 %v940_v25, %v926_v26 }
 0x150   : > { %v847_v20 = vpop.f32.mrf.mxu2  ;;  %v876_v21 = vpop.f32.mrf.mxu3 }
 0x151   : > { %v2840_v24 = vadd.f32 %v847_v20, %v774_v15  ;;  %v2848_v32 = vadd.f32 %v876_v21, %v774_v15  ;;  %v2451_v6 = vpop.eup %2450 }
 0x152   : > { %v909_v7 = vmul.f32 16384.0, %v2451_v6  ;;  %vm913_vm4 = vweird.f32 %v2451_v6 }
 0x153   : > { %v927_v28 = vmul.f32 %v2840_v24, %v2840_v24  ;;  %v893_v31 = vadd.f32 %v892_v27, %v2840_v24  ;;  %v928_v38 = vmul.f32 %v2848_v32, %v2848_v32 }
 0x154   : > { %v910_v8 = vsub.f32 1.0, %v909_v7 }
 0x155   : > { %v942_v35 = vadd.f32 %v941_v30, %v927_v28  ;;  %v894_v37 = vadd.f32 %v893_v31, %v2848_v32 }
 0x156   : > { %v911_v16 = vmul.f32 %v2451_v6, %v910_v8 }
 0x157   : > { %v943_v40 = vadd.f32 %v942_v35, %v928_v38 }
 0x158   : > { %v850_v33 = vpop.f32.mrf.mxu2  ;;  %v879_v34 = vpop.f32.mrf.mxu3  ;;  %v912_v22 = vadd.f32 %v2451_v6, %v911_v16 }
 0x159   : > { %v2850_v36 = vadd.f32 %v850_v33, %v779_v29  ;;  %v2858_v44 = vadd.f32 %v879_v34, %v779_v29 }
 0x15a   : > { %v914_v27 = vsel %vm913_vm4, %v2451_v6, %v912_v22 }
 0x15b   : > { %v929_v39 = vmul.f32 %v2850_v36, %v2850_v36  ;;  %v895_v41 = vadd.f32 %v894_v37, %v2850_v36  ;;  %v930_v51 = vmul.f32 %v2858_v44, %v2858_v44 }
 0x15d   : > { %v944_v47 = vadd.f32 %v943_v40, %v929_v39  ;;  %v896_v50 = vadd.f32 %v895_v41, %v2858_v44 }
 0x15f   : > { %v945_v58 = vadd.f32 %v944_v47, %v930_v51  ;;  %v724_v47 = vld [vmem:[%s3826_s6 + $0x70] sm:$0xff] }
 0x160   : > { %v852_v48 = vpop.f32.mrf.mxu2  ;;  %v881_v49 = vpop.f32.mrf.mxu3 }
 0x161   : > { %v2863_v52 = vadd.f32 %v852_v48, %v784_v45  ;;  %v2865_v53 = vadd.f32 %v881_v49, %v784_v45  ;;  %v722_v45 = vld [vmem:[%s3826_s6 + $0x60] sm:$0xff] }
 0x163   : > { %v931_v54 = vmul.f32 %v2863_v52, %v2863_v52  ;;  %v897_v57 = vadd.f32 %v896_v50, %v2863_v52  ;;  %v932_v60 = vmul.f32 %v2865_v53, %v2865_v53 }
 0x165   : > { %v898_v59 = vadd.f32 %v897_v57, %v2865_v53  ;;  %v946_v61 = vadd.f32 %v945_v58, %v931_v54  ;;  %v738_v54 = vld [vmem:[%s3827_s7 + $0x60] sm:$0xff]  ;;  %v723_v57 = vld [vmem:[%s3826_s6 + $0x68] sm:$0xff] }
 0x167   : > { %899 = vadd.xlane.f32.xlu0 %v898_v59  ;;  %v947_v62 = vadd.f32 %v946_v61, %v932_v60 }
 0x169   : > { %948 = vadd.xlane.f32.xlu1 %v947_v62  ;;  %v718_v62 = vld [vmem:[%s3826_s6 + $0x40] sm:$0xff] }
 0x17b   : > { %1489 = vperm.xlu0 %2447, %v1423_v0   ;;  %v739_v0 = vld [vmem:[%s3827_s7 + $0x68] sm:$0xff] }
 0x182   : > { %1494 = vperm.xlu1 %2448, %v1424_v1   ;;  %v741_v1 = vld [vmem:[%s3827_s7 + $0x78] sm:$0xff] }
 0x18a   : > { %2091 = vperm.xlu1 %2448, %v1459_v3  }
 0x192   : > { %1377 = vperm.xlu1 %2448, %v743_v4  }
 0x1da   : > { %v900_v9 = vpop.xlane.xlu0 %899 }
 0x1db   : > { %v901_v10 = vrot.slane %v900_v9, 4 }
 0x1dc   : > { %v949_v11 = vpop.xlane.xlu1 %948 }
 0x1dd   : > { %v902_v14 = vadd.f32 %v901_v10, %v900_v9  ;;  %v950_v15 = vrot.slane %v949_v11, 4 }
 0x1df   : > { %v903_v17 = vrot.slane %v902_v14, 2  ;;  %v951_v18 = vadd.f32 %v950_v15, %v949_v11  ;;  %v734_v11 = vld [vmem:[%s3827_s7 + $0x40] sm:$0xff] }
 0x1e1   : > { %v952_v20 = vrot.slane %v951_v18, 2  ;;  %v904_v21 = vadd.f32 %v903_v17, %v902_v14  ;;  %v736_v14 = vld [vmem:[%s3827_s7 + $0x50] sm:$0xff] }
 0x1e3   : > { %v905_v23 = vrot.slane %v904_v21, 1  ;;  %v953_v25 = vadd.f32 %v952_v20, %v951_v18 }
 0x1e5   : > { %v906_v26 = vadd.f32 %v905_v23, %v904_v21  ;;  %v954_v28 = vrot.slane %v953_v25, 1  ;;  %v721_v23 = vld [vmem:[%s3826_s6 + $0x58] sm:$0xff] }
 0x1e7   : > { %2421 = vpush %v906_v26  ;;  %v955_v29 = vadd.f32 %v954_v28, %v953_v25  ;;  %v714_v28 = vld [vmem:[%s3826_s6 + $0x20] sm:$0xff] }
 0x1e8   : > { %2423 = vpush %v914_v27  ;;  %v735_v27 = vld [vmem:[%s3827_s7 + $0x48] sm:$0xff] }
 0x1e9   : > { %2425 = vpush %v955_v29 }
 0x218   : > { %s2422_s20 = spop %2421 }
 0x219   : > { %s2885_s21 = spop %2423 }
 0x21a   : > { %s916_s22 = smul.f32 %s2885_s21, %s2422_s20  ;;  %s2426_s2 = spop %2425 }
 0x21b   : > { %s965_s24 = smul.f32 %s2426_s2, %s2885_s21  ;;  %s2410_s20 = sshll.u32 %s3898_s30, 4 }
 0x21c   : > { %s966_s25 = smul.f32 %s916_s22, %s916_s22  ;;  %v2889_v40 = vstv %s916_s22  ;;  %s3890_s2 = sld [smem:[#allocation3_spill]] }
 0x21d   : > { %v981_v41 = vsub.f32 %v2850_v36, %v2889_v40  ;;  %v983_v48 = vsub.f32 %v2863_v52, %v2889_v40  ;;  %v982_v49 = vsub.f32 %v2858_v44, %v2889_v40  ;;  %v984_v50 = vsub.f32 %v2865_v53, %v2889_v40  ;;  %v725_v44 = vld [vmem:[%s3826_s6 + $0x78] sm:$0xff] }
 0x21e   : > { %s967_s3 = ssub.f32 %s965_s24, %s966_s25  ;;  %v977_v36 = vsub.f32 %v2830_v13, %v2889_v40  ;;  %v979_v52 = vsub.f32 %v2840_v24, %v2889_v40  ;;  %v978_v13 = vsub.f32 %v2837_v19, %v2889_v40  ;;  %v980_v53 = vsub.f32 %v2848_v32, %v2889_v40  ;;  %v720_v24 = vld [vmem:[%s3826_s6 + $0x50] sm:$0xff]  ;;  %v719_v19 = vld [vmem:[%s3826_s6 + $0x48] sm:$0xff] }
 0x21f   : > { %v740_v32 = vld [vmem:[%s3827_s7 + $0x70] sm:$0xff]  ;;  %v973_v6 = vsub.f32 %v2810_v56, %v2889_v40  ;;  %v975_v29 = vsub.f32 %v2820_v2, %v2889_v40  ;;  %v737_v2 = vld [vmem:[%s3827_s7 + $0x58] sm:$0xff] }
 0x220   : > { %s985_s26 = sadd.f32 1e-05, %s967_s3 }
 0x222   : > { %v986_v30 = vstv %s985_s26 }
 0x223   : > { %2452 = vrsqrt.f32 %v986_v30  ;;  %vm993_vm6 = vweird.f32 %v986_v30 }
 0x229   : > { %v2453_v31 = vpop.eup %2452 }
 0x22a   : > { %v988_v33 = vmul.f32 %v2453_v31, %v986_v30  ;;  %vm994_vm5 = vweird.f32 %v2453_v31 }
 0x22b   : > { %vm995_vm7 = vmor %vm993_vm6, %vm994_vm5 }
 0x22c   : > { %v989_v34 = vmul.f32 %v2453_v31, %v988_v33 }
 0x22e   : > { %v990_v35 = vmul.f32 0.5, %v989_v34 }
 0x230   : > { %v991_v37 = vsub.f32 1.5, %v990_v35 }
 0x232   : > { %v992_v38 = vmul.f32 %v2453_v31, %v991_v37 }
 0x234   : > { %v996_v39 = vsel %vm995_vm7, %v2453_v31, %v992_v38 }
 0x235   : > { %2427 = vpush %v996_v39 }
 0x266   : > { %s2428_s27 = spop %2427 }
 0x267   : > { %v2907_v51 = vstv %s2428_s27 }
 0x268   : > { %v1011_v58 = vmul.f32 %v2907_v51, %v981_v41  ;;  %v1013_v59 = vmul.f32 %v2907_v51, %v983_v48  ;;  %v1012_v60 = vmul.f32 %v2907_v51, %v982_v49  ;;  %v1014_v61 = vmul.f32 %v2907_v51, %v984_v50  ;;  %v730_v49 = vld [vmem:[%s3827_s7 + $0x20] sm:$0xff] }
 0x269   : > { %v1007_v3 = vmul.f32 %v2907_v51, %v977_v36  ;;  %v1009_v4 = vmul.f32 %v2907_v51, %v979_v52  ;;  %v1008_v5 = vmul.f32 %v2907_v51, %v978_v13  ;;  %v1010_v17 = vmul.f32 %v2907_v51, %v980_v53 }
 0x26a   : > { %v1027_v7 = vmul.f32 %v1011_v58, %v722_v45  ;;  %v1029_v8 = vmul.f32 %v1013_v59, %v724_v47  ;;  %v1028_v9 = vmul.f32 %v1012_v60, %v723_v57  ;;  %v1030_v10 = vmul.f32 %v1014_v61, %v725_v44  ;;  %v716_v45 = vld [vmem:[%s3826_s6 + $0x30] sm:$0xff] }
 0x26b   : > { %v1023_v15 = vmul.f32 %v1007_v3, %v718_v62  ;;  %v1025_v16 = vmul.f32 %v1009_v4, %v720_v24  ;;  %v1024_v18 = vmul.f32 %v1008_v5, %v719_v19  ;;  %v1003_v34 = vmul.f32 %v2907_v51, %v973_v6  ;;  %v732_v44 = vld [vmem:[%s3827_s7 + $0x30] sm:$0xff] }
 0x26c   : > { %v2958_v20 = vadd.f32 %v1027_v7, %v738_v54  ;;  %v2960_v56 = vadd.f32 %v1029_v8, %v740_v32  ;;  %v2962_v21 = vadd.f32 %v1028_v9, %v739_v0  ;;  %v2964_v22 = vadd.f32 %v1030_v10, %v741_v1  ;;  %v731_v8 = vld [vmem:[%s3827_s7 + $0x28] sm:$0xff] }
 0x26d   : > { %v2969_v25 = vadd.f32 %v1023_v15, %v734_v11  ;;  %v2971_v26 = vadd.f32 %v1025_v16, %v736_v14  ;;  %v1026_v37 = vmul.f32 %v1010_v17, %v721_v23  ;;  %v1005_v38 = vmul.f32 %v2907_v51, %v975_v29  ;;  %v733_v17 = vld [vmem:[%s3827_s7 + $0x38] sm:$0xff] }
 0x26e   : > { %v2357_v30 = vmul.f32 -1.442695, %v2958_v20  ;;  %v2359_v31 = vmul.f32 -1.442695, %v2960_v56  ;;  %v2358_v33 = vmul.f32 -1.442695, %v2962_v21  ;;  %v2991_v41 = vadd.f32 %v1024_v18, %v735_v27 }
 0x26f   : > { %v2360_v35 = vmul.f32 -1.442695, %v2964_v22  ;;  %v2353_v39 = vmul.f32 -1.442695, %v2969_v25  ;;  %v1019_v47 = vmul.f32 %v1003_v34, %v714_v28  ;;  %v2355_v48 = vmul.f32 -1.442695, %v2971_v26 }
 0x270   : > { %2454 = vpow2.f32 %v2357_v30  ;;  %v3000_v50 = vadd.f32 %v1026_v37, %v737_v2  ;;  %v1021_v36 = vmul.f32 %v1005_v38, %v716_v45  ;;  %v974_v54 = vsub.f32 %v2817_v63, %v2889_v40  ;;  %v715_v63 = vld [vmem:[%s3826_s6 + $0x28] sm:$0xff] }
 0x271   : > { %2456 = vpow2.f32 %v2359_v31  ;;  %v2354_v57 = vmul.f32 -1.442695, %v2991_v41  ;;  %v3008_v52 = vadd.f32 %v1019_v47, %v730_v49  ;;  %v976_v13 = vsub.f32 %v2828_v12, %v2889_v40  ;;  %v717_v12 = vld [vmem:[%s3826_s6 + $0x38] sm:$0xff] }
 0x272   : > { %2458 = vpow2.f32 %v2358_v33  ;;  %v1004_v53 = vmul.f32 %v2907_v51, %v974_v54  ;;  %v2356_v62 = vmul.f32 -1.442695, %v3000_v50  ;;  %v3020_v24 = vadd.f32 %v1021_v36, %v732_v44 }
 0x273   : > { %2460 = vpow2.f32 %v2360_v35  ;;  %v1006_v59 = vmul.f32 %v2907_v51, %v976_v13  ;;  %v969_v19 = vsub.f32 %v2793_v42, %v2889_v40  ;;  %v2349_v1 = vmul.f32 -1.442695, %v3008_v52 }
 0x274   : > { %2462 = vpow2.f32 %v2353_v39  ;;  %v971_v3 = vsub.f32 %v2797_v46, %v2889_v40  ;;  %v1020_v5 = vmul.f32 %v1004_v53, %v715_v63  ;;  %v970_v6 = vsub.f32 %v2795_v43, %v2889_v40 }
 0x275   : > { %2464 = vpow2.f32 %v2355_v48  ;;  %v972_v7 = vsub.f32 %v2808_v55, %v2889_v40  ;;  %v1022_v9 = vmul.f32 %v1006_v59, %v717_v12  ;;  %v3042_v46 = vmul.f32 %v2907_v51, %v969_v19 }
 0x276   : > { %v2455_v58 = vpop.eup %2454  ;;  %2466 = vpow2.f32 %v2354_v57  ;;  %v3045_v10 = vmul.f32 %v2907_v51, %v971_v3  ;;  %v3052_v16 = vmul.f32 -1.442695, %v3020_v24  ;;  %v3064_v30 = vadd.f32 %v1020_v5, %v731_v8 }
 0x277   : > { %v2457_v60 = vpop.eup %2456  ;;  %v3017_v61 = vadd.f32 1.0, %v2455_v58  ;;  %v3070_v35 = vadd.f32 %v1022_v9, %v733_v17  ;;  %v1002_v43 = vmul.f32 %v2907_v51, %v972_v7 }
 0x278   : > { %v2459_v32 = vpop.eup %2458  ;;  %v3027_v0 = vadd.f32 1.0, %v2457_v60 }
 0x279   : > { %v2461_v4 = vpop.eup %2460  ;;  %2468 = vrcp.f32 %v3017_v61  ;;  %v3047_v14 = vadd.f32 1.0, %v2459_v32  ;;  %v1300_v18 = vand.u32 2147483647, %v3017_v61  ;;  %v1302_v23 = vand.u32 2147483648, %v3017_v61 }
 0x27a   : > { %v2463_v42 = vpop.eup %2462  ;;  %2470 = vrcp.f32 %v3027_v0  ;;  %v3049_v15 = vadd.f32 1.0, %v2461_v4  ;;  %v1330_v28 = vand.u32 2147483647, %v3027_v0  ;;  %v1332_v29 = vand.u32 2147483648, %v3027_v0 }
 0x27b   : > { %v2465_v11 = vpop.eup %2464  ;;  %2472 = vpow2.f32 %v2356_v62  ;;  %v3059_v27 = vadd.f32 1.0, %v2463_v42  ;;  %v1317_v33 = vand.u32 2147483648, %v3047_v14  ;;  %vm1296_vm8 = vweird.f32 %v3017_v61 }
 0x27c   : > { %2474 = vpow2.f32 %v2349_v1  ;;  %v2467_v31 = vpop.eup %2466  ;;  %v3068_v34 = vadd.f32 1.0, %v2465_v11  ;;  %vm1326_vm9 = vweird.f32 %v3027_v0  ;;  %v1347_v38 = vand.u32 2147483648, %v3049_v15 }
 0x27d   : > { %2476 = vrcp.f32 %v3047_v14  ;;  %vm3077_vm10 = vcmp.eq.f32.partialorder %v1300_v18, 8.507059e+37  ;;  %v1303_v47 = vor.u32 1.1754944e-38, %v1302_v23  ;;  %v1315_v48 = vand.u32 2147483647, %v3047_v14 }
 0x27e   : > { %2478 = vrcp.f32 %v3049_v15  ;;  %vm3083_vm11 = vcmp.eq.f32.partialorder %v1330_v28, 8.507059e+37  ;;  %v1333_v57 = vor.u32 1.1754944e-38, %v1332_v29  ;;  %v1345_v44 = vand.u32 2147483647, %v3049_v15 }
 0x27f   : > { %v2469_v37 = vpop.eup %2468  ;;  %2480 = vrcp.f32 %v3059_v27  ;;  %v1242_v13 = vand.u32 2147483648, %v3059_v27  ;;  %vm1311_vm13 = vweird.f32 %v3047_v14  ;;  %v1318_v63 = vor.u32 1.1754944e-38, %v1317_v33 }
 0x280   : > { %v2471_v39 = vpop.eup %2470  ;;  %v1292_v2 = vmul.f32 %v2469_v37, %v3017_v61  ;;  %vm1297_vm12 = vweird.f32 %v2469_v37  ;;  %2482 = vrcp.f32 %v3068_v34  ;;  %vm1341_vm15 = vweird.f32 %v3049_v15 }
 0x281   : > { %v2473_v49 = vpop.eup %2472  ;;  %v1322_v36 = vmul.f32 %v2471_v39, %v3027_v0  ;;  %vm1327_vm14 = vweird.f32 %v2471_v39  ;;  %v1348_v62 = vor.u32 1.1754944e-38, %v1347_v38  ;;  %v1240_v12 = vand.u32 2147483647, %v3059_v27  ;;  %vm1298_vm0 = vmor %vm1296_vm8, %vm1297_vm12 }
 0x282   : > { %v3089_v53 = vpop.eup %2474  ;;  %v1293_v58 = vsub.f32 1.0, %v1292_v2  ;;  %vm3096_vm1 = vcmp.eq.f32.partialorder %v1315_v48, 8.507059e+37  ;;  %vm1236_vm4 = vweird.f32 %v3059_v27  ;;  %v1243_v4 = vor.u32 1.1754944e-38, %v1242_v13  ;;  %vm1328_vm2 = vmor %vm1326_vm9, %vm1327_vm14 }
 0x283   : > { %v2477_v59 = vpop.eup %2476  ;;  %v1323_v60 = vsub.f32 1.0, %v1322_v36  ;;  %v1270_v5 = vand.u32 2147483647, %v3068_v34  ;;  %vm3103_vm6 = vcmp.eq.f32.partialorder %v1345_v44, 8.507059e+37  ;;  %v1272_v17 = vand.u32 2147483648, %v3068_v34 }
 0x284   : > { %v2479_v19 = vpop.eup %2478  ;;  %v1294_v32 = vmul.f32 %v2469_v37, %v1293_v58  ;;  %v1307_v1 = vmul.f32 %v2477_v59, %v3047_v14  ;;  %vm1312_vm5 = vweird.f32 %v2477_v59  ;;  %v3112_v38 = vadd.f32 1.0, %v2467_v31 }
 0x285   : > { %v2481_v42 = vpop.eup %2480  ;;  %v1324_v8 = vmul.f32 %v2471_v39, %v1323_v60  ;;  %v1337_v9 = vmul.f32 %v2479_v19, %v3049_v15  ;;  %vm1342_vm7 = vweird.f32 %v2479_v19  ;;  %2484 = vpow2.f32 %v3052_v16 }
 0x286   : > { %v1295_v18 = vadd.f32 %v2469_v37, %v1294_v32  ;;  %v1308_v23 = vsub.f32 1.0, %v1307_v1  ;;  %v1232_v28 = vmul.f32 %v2481_v42, %v3059_v27  ;;  %vm1237_vm3 = vweird.f32 %v2481_v42  ;;  %v2483_v2 = vpop.eup %2482 }
 0x287   : > { %v1325_v29 = vadd.f32 %v2471_v39, %v1324_v8  ;;  %v1338_v33 = vsub.f32 1.0, %v1337_v9  ;;  %v1262_v60 = vmul.f32 %v2483_v2, %v3068_v34  ;;  %vm1267_vm8 = vweird.f32 %v2483_v2  ;;  %vm1238_vm9 = vmor %vm1236_vm4, %vm1237_vm3 }
 0x288   : > { %v1299_v48 = vsel %vm1298_vm0, %v2469_v37, %v1295_v18  ;;  %v1309_v36 = vmul.f32 %v2477_v59, %v1308_v23  ;;  %v1233_v44 = vsub.f32 1.0, %v1232_v28  ;;  %vm1313_vm0 = vmor %vm1311_vm13, %vm1312_vm5  ;;  %2486 = vrcp.f32 %v3112_v38  ;;  %v726_v23 = vld [vmem:[%s3827_s7] sm:$0xff] }
 0x289   : > { %v1304_v13 = vsel %vm3077_vm10, %v1303_v47, %v1299_v48  ;;  %v1329_v61 = vsel %vm1328_vm2, %v2471_v39, %v1325_v29  ;;  %v1339_v58 = vmul.f32 %v2479_v19, %v1338_v33  ;;  %v1263_v45 = vsub.f32 1.0, %v1262_v60  ;;  %vm1343_vm2 = vmor %vm1341_vm15, %vm1342_vm7 }
 0x28a   : > { %v1334_v31 = vsel %vm3083_vm11, %v1333_v57, %v1329_v61  ;;  %v1363_v37 = vmul.f32 %v1304_v13, %v2958_v20  ;;  %v1310_v32 = vadd.f32 %v2477_v59, %v1309_v36  ;;  %v1234_v1 = vmul.f32 %v2481_v42, %v1233_v44 }
 0x28b   : > { %v1365_v0 = vmul.f32 %v1334_v31, %v2960_v56  ;;  %v1340_v16 = vadd.f32 %v2479_v19, %v1339_v58  ;;  %v3128_v47 = vadd.f32 1.0, %v2473_v49  ;;  %v1264_v14 = vmul.f32 %v2483_v2, %v1263_v45  ;;  %v710_v49 = vld [vmem:[%s3826_s6] sm:$0xff]  ;;  %v2485_v15 = vpop.eup %2484 }
 0x28c   : > { %v1314_v39 = vsel %vm1313_vm0, %v2477_v59, %v1310_v32  ;;  %v1235_v54 = vadd.f32 %v2481_v42, %v1234_v1  ;;  %vm1241_vm10 = vcmp.eq.f32.partialorder %v1240_v12, 8.507059e+37  ;;  %vm1266_vm3 = vweird.f32 %v3068_v34 }
 0x28d   : > { %v1373_v20 = vpack.c.bf16 %v1365_v0, %v1363_v37  ;;  %v1319_v56 = vsel %vm3096_vm1, %v1318_v63, %v1314_v39  ;;  %v1344_v57 = vsel %vm1343_vm2, %v2479_v19, %v1340_v16  ;;  %v1265_v3 = vadd.f32 %v2483_v2, %v1264_v14  ;;  %vm1268_vm11 = vmor %vm1266_vm3, %vm1267_vm8 }
 0x28e   : > { %v1349_v59 = vsel %vm3103_vm6, %v1348_v62, %v1344_v57  ;;  %v1364_v8 = vmul.f32 %v1319_v56, %v2962_v21  ;;  %v1239_v9 = vsel %vm1238_vm9, %v2481_v42, %v1235_v54  ;;  %vm1271_vm12 = vcmp.eq.f32.partialorder %v1270_v5, 8.507059e+37  ;;  %v712_v62 = vld [vmem:[%s3826_s6 + $0x10] sm:$0xff]  ;;  %v2487_v11 = vpop.eup %2486 }
 0x28f   : > { %1388 = vmatpush.bf16.msrb.mxu0 %v1373_v20  ;;  %v1366_v63 = vmul.f32 %v1349_v59, %v2964_v22  ;;  %v1244_v19 = vsel %vm1241_vm10, %v1243_v4, %v1239_v9  ;;  %v1273_v27 = vor.u32 1.1754944e-38, %v1272_v17  ;;  %2488 = vrcp.f32 %v3128_v47 }
 0x290   : > { %v1015_v21 = vmul.f32 %v3042_v46, %v710_v49  ;;  %v1269_v42 = vsel %vm1268_vm11, %v2483_v2, %v1265_v3  ;;  %v1359_v22 = vmul.f32 %v1244_v19, %v2969_v25  ;;  %v1255_v4 = vand.u32 2147483647, %v3112_v38  ;;  %v711_v3 = vld [vmem:[%s3826_s6 + $0x8] sm:$0xff] }
 0x291   : > { %v1374_v12 = vpack.c.bf16 %v1366_v63, %v1364_v8  ;;  %v1274_v34 = vsel %vm1271_vm12, %v1273_v27, %v1269_v42  ;;  %v1257_v18 = vand.u32 2147483648, %v3112_v38  ;;  %v3157_v5 = vadd.f32 1.0, %v3089_v53 }
 0x292   : > { %v3159_v17 = vadd.f32 1.0, %v2485_v15  ;;  %v1361_v46 = vmul.f32 %v1274_v34, %v2971_v26  ;;  %v1247_v25 = vmul.f32 %v2487_v11, %v3112_v38  ;;  %v1285_v28 = vand.u32 2147483647, %v3128_v47  ;;  %v728_v26 = vld [vmem:[%s3827_s7 + $0x10] sm:$0xff]  ;;  %v713_v34 = vld [vmem:[%s3826_s6 + $0x18] sm:$0xff] }
 0x293   : > { %1401 = vmatpush.bf16.msrb.mxu1 %v1374_v12  ;;  %v1017_v29 = vmul.f32 %v3045_v10, %v712_v62  ;;  %v1287_v33 = vand.u32 2147483648, %v3128_v47  ;;  %2490 = vrcp.f32 %v3157_v5  ;;  %v2350_v53 = vmul.f32 -1.442695, %v3064_v30 }
 0x294   : > { %v2352_v2 = vmul.f32 -1.442695, %v3070_v35  ;;  %v1371_v48 = vpack.c.bf16 %v1361_v46, %v1359_v22  ;;  %v1248_v36 = vsub.f32 1.0, %v1247_v25  ;;  %2492 = vrcp.f32 %v3159_v17 }
 0x295   : > { %v3176_v44 = vadd.f32 %v1015_v21, %v726_v23  ;;  %v2489_v13 = vpop.eup %2488  ;;  %vm1251_vm13 = vweird.f32 %v3112_v38  ;;  %vm3179_vm14 = vcmp.eq.f32.partialorder %v1255_v4, 8.507059e+37  ;;  %v1258_v61 = vor.u32 1.1754944e-38, %v1257_v18 }
 0x296   : > { %vm1281_vm15 = vweird.f32 %v3128_v47  ;;  %1389 = vmatpush.bf16.msrb.mxu0 %v1371_v48  ;;  %v1249_v58 = vmul.f32 %v2487_v11, %v1248_v36  ;;  %vm1252_vm1 = vweird.f32 %v2487_v11  ;;  %v1277_v60 = vmul.f32 %v2489_v13, %v3128_v47 }
 0x297   : > { %vm3185_vm4 = vcmp.eq.f32.partialorder %v1285_v28, 8.507059e+37  ;;  %v1288_v37 = vor.u32 1.1754944e-38, %v1287_v33  ;;  %v1180_v32 = vand.u32 2147483647, %v3157_v5  ;;  %2494 = vpow2.f32 %v2350_v53  ;;  %vm1253_vm5 = vmor %vm1251_vm13, %vm1252_vm1 }
 0x298   : > { %v3190_v1 = vadd.f32 %v1017_v29, %v728_v26  ;;  %v1250_v0 = vadd.f32 %v2487_v11, %v1249_v58  ;;  %v1278_v16 = vsub.f32 1.0, %v1277_v60  ;;  %2496 = vpow2.f32 %v2352_v2 }
 0x299   : > { %v2345_v45 = vmul.f32 -1.442695, %v3176_v44  ;;  %v2491_v39 = vpop.eup %2490  ;;  %vm1176_vm6 = vweird.f32 %v3157_v5  ;;  %v1182_v54 = vand.u32 2147483648, %v3157_v5  ;;  %v1210_v20 = vand.u32 2147483647, %v3159_v17 }
 0x29a   : > { %v2347_v56 = vmul.f32 -1.442695, %v3190_v1  ;;  %v2493_v57 = vpop.eup %2492  ;;  %v1254_v14 = vsel %vm1253_vm5, %v2487_v11, %v1250_v0  ;;  %v1279_v49 = vmul.f32 %v2489_v13, %v1278_v16  ;;  %vm1282_vm7 = vweird.f32 %v2489_v13 }
 0x29b   : > { %v1172_v15 = vmul.f32 %v2491_v39, %v3157_v5  ;;  %v1259_v59 = vsel %vm3179_vm14, %v1258_v61, %v1254_v14  ;;  %v1202_v38 = vmul.f32 %v2493_v57, %v3159_v17  ;;  %2498 = vpow2.f32 %v2345_v45  ;;  %vm1283_vm0 = vmor %vm1281_vm15, %vm1282_vm7  ;;  %v729_v5 = vld [vmem:[%s3827_s7 + $0x18] sm:$0xff] }
 0x29c   : > { %v1000_v8 = vmul.f32 %v2907_v51, %v970_v6  ;;  %v1280_v9 = vadd.f32 %v2489_v13, %v1279_v49  ;;  %v1212_v19 = vand.u32 2147483648, %v3159_v17  ;;  %2500 = vpow2.f32 %v2347_v56 }
 0x29d   : > { %v1173_v63 = vsub.f32 1.0, %v1172_v15  ;;  %v2495_v27 = vpop.eup %2494  ;;  %vm1177_vm2 = vweird.f32 %v2491_v39  ;;  %v1203_v62 = vsub.f32 1.0, %v1202_v38  ;;  %vm1207_vm8 = vweird.f32 %v2493_v57 }
 0x29e   : > { %v2497_v6 = vpop.eup %2496  ;;  %v1284_v21 = vsel %vm1283_vm0, %v2489_v13, %v1280_v9  ;;  %v1360_v12 = vmul.f32 %v1259_v59, %v2991_v41  ;;  %v3218_v22 = vadd.f32 1.0, %v2495_v27  ;;  %v1016_v55 = vmul.f32 %v1000_v8, %v711_v3  ;;  %v727_v41 = vld [vmem:[%s3827_s7 + $0x8] sm:$0xff]  ;;  %vm1178_vm10 = vmor %vm1176_vm6, %vm1177_vm2 }
 0x29f   : > { %v1174_v42 = vmul.f32 %v2491_v39, %v1173_v63  ;;  %v1289_v4 = vsel %vm3185_vm4, %v1288_v37, %v1284_v21  ;;  %v1204_v47 = vmul.f32 %v2493_v57, %v1203_v62  ;;  %v3222_v11 = vadd.f32 1.0, %v2497_v6 }
 0x2a0   : > { %v1362_v40 = vmul.f32 %v1289_v4, %v3000_v50  ;;  %vm1181_vm9 = vcmp.eq.f32.partialorder %v1180_v32, 8.507059e+37  ;;  %2502 = vrcp.f32 %v3218_v22  ;;  %v1183_v18 = vor.u32 1.1754944e-38, %v1182_v54 }
 0x2a1   : > { %v1175_v51 = vadd.f32 %v2491_v39, %v1174_v42  ;;  %v2499_v7 = vpop.eup %2498  ;;  %v1205_v23 = vadd.f32 %v2493_v57, %v1204_v47  ;;  %vm1206_vm3 = vweird.f32 %v3159_v17  ;;  %2504 = vrcp.f32 %v3222_v11  ;;  %v646_v42 = vpop.permute.xlu2 %645 }
 0x2a2   : > { %v2501_v50 = vpop.eup %2500  ;;  %v1372_v46 = vpack.c.bf16 %v1362_v40, %v1360_v12  ;;  %vm1208_vm11 = vmor %vm1206_vm3, %vm1207_vm8  ;;  %v1213_v28 = vor.u32 1.1754944e-38, %v1212_v19  ;;  %v1018_v29 = vmul.f32 %v1002_v43, %v713_v34  ;;  %vm1211_vm12 = vcmp.eq.f32.partialorder %v1210_v20, 8.507059e+37 }
 0x2a3   : > { %v1179_v25 = vsel %vm1178_vm10, %v2491_v39, %v1175_v51  ;;  %v1209_v53 = vsel %vm1208_vm11, %v2493_v57, %v1205_v23  ;;  %v3241_v2 = vadd.f32 %v1016_v55, %v727_v41  ;;  %v3245_v26 = vadd.f32 1.0, %v2499_v7 }
 0x2a4   : > { %v1184_v33 = vsel %vm1181_vm9, %v1183_v18, %v1179_v25  ;;  %1402 = vmatpush.bf16.msrb.mxu1 %v1372_v46  ;;  %v1214_v17 = vsel %vm1211_vm12, %v1213_v28, %v1209_v53  ;;  %v3247_v13 = vadd.f32 1.0, %v2501_v50  ;;  %v3249_v61 = vadd.f32 %v1018_v29, %v729_v5 }
 0x2a5   : > { %v1355_v48 = vmul.f32 %v1184_v33, %v3008_v52  ;;  %v1357_v36 = vmul.f32 %v1214_v17, %v3020_v24  ;;  %2506 = vrcp.f32 %v3245_v26  ;;  %v2346_v37 = vmul.f32 -1.442695, %v3241_v2 }
 0x2a6   : > { %v2503_v10 = vpop.eup %2502  ;;  %v1195_v24 = vand.u32 2147483647, %v3218_v22  ;;  %2508 = vrcp.f32 %v3247_v13  ;;  %v1197_v0 = vand.u32 2147483648, %v3218_v22  ;;  %v1225_v45 = vand.u32 2147483647, %v3222_v11 }
 0x2a7   : > { %v2505_v58 = vpop.eup %2504  ;;  %v1369_v60 = vpack.c.bf16 %v1357_v36, %v1355_v48  ;;  %v1187_v31 = vmul.f32 %v2503_v10, %v3218_v22  ;;  %v1227_v39 = vand.u32 2147483648, %v3222_v11  ;;  %vm1192_vm13 = vweird.f32 %v2503_v10 }
 0x2a8   : > { %v1217_v32 = vmul.f32 %v2505_v58, %v3222_v11  ;;  %2510 = vpow2.f32 %v2346_v37  ;;  %v2348_v20 = vmul.f32 -1.442695, %v3249_v61  ;;  %vm1222_vm14 = vweird.f32 %v2505_v58 }
 0x2a9   : > { %1390 = vmatpush.bf16.msrb.mxu0 %v1369_v60  ;;  %v1188_v52 = vsub.f32 1.0, %v1187_v31  ;;  %vm1191_vm15 = vweird.f32 %v3218_v22  ;;  %vm1221_vm1 = vweird.f32 %v3222_v11  ;;  %vm1196_vm5 = vcmp.eq.f32.partialorder %v1195_v24, 8.507059e+37  ;;  %v677_v22 = vpop.f32.mrf.mxu0  ;;  %v742_v31 = vld [vmem:[%s3828_s8] sm:$0xf] }
 0x2aa   : > { %v1218_v16 = vsub.f32 1.0, %v1217_v32  ;;  %2512 = vpow2.f32 %v2348_v20  ;;  %vm1193_vm4 = vmor %vm1191_vm15, %vm1192_vm13  ;;  %v1198_v49 = vor.u32 1.1754944e-38, %v1197_v0  ;;  %vm1226_vm7 = vcmp.eq.f32.partialorder %v1225_v45, 8.507059e+37  ;;  %v691_v32 = vpop.f32.mrf.mxu1 }
 0x2ab   : > { %v1189_v54 = vmul.f32 %v2503_v10, %v1188_v52  ;;  %v2507_v57 = vpop.eup %2506  ;;  %vm1223_vm6 = vmor %vm1221_vm1, %vm1222_vm14  ;;  %v1228_v9 = vor.u32 1.1754944e-38, %v1227_v39  ;;  %v1120_v63 = vand.u32 2147483647, %v3245_v26  ;;  %v1122_v12 = vand.u32 2147483648, %v3245_v26 }
 0x2ac   : > { %v1219_v56 = vmul.f32 %v2505_v58, %v1218_v16  ;;  %v1112_v59 = vmul.f32 %v2507_v57, %v3245_v26  ;;  %v2509_v38 = vpop.eup %2508  ;;  %vm1117_vm0 = vweird.f32 %v2507_v57  ;;  %vm1116_vm2 = vweird.f32 %v3245_v26 }
 0x2ad   : > { %v1190_v14 = vadd.f32 %v2503_v10, %v1189_v54  ;;  %v1142_v62 = vmul.f32 %v2509_v38, %v3247_v13  ;;  %vm1147_vm8 = vweird.f32 %v2509_v38  ;;  %v1150_v40 = vand.u32 2147483647, %v3247_v13  ;;  %vm1118_vm9 = vmor %vm1116_vm2, %vm1117_vm0 }
 0x2ae   : > { %v1220_v15 = vadd.f32 %v2505_v58, %v1219_v56  ;;  %v1113_v27 = vsub.f32 1.0, %v1112_v59  ;;  %v2511_v43 = vpop.eup %2510  ;;  %v1152_v51 = vand.u32 2147483648, %v3247_v13  ;;  %v678_v23 = vadd.f32 %v677_v22, %v646_v42 }
 0x2af   : > { %v1194_v8 = vsel %vm1193_vm4, %v2503_v10, %v1190_v14  ;;  %v1143_v11 = vsub.f32 1.0, %v1142_v62  ;;  %v1096_v34 = vadd.f32 1.0, %v2511_v43  ;;  %v1123_v50 = vor.u32 1.1754944e-38, %v1122_v12 }
 0x2b0   : > { %v1199_v19 = vsel %vm1196_vm5, %v1198_v49, %v1194_v8  ;;  %v1224_v3 = vsel %vm1223_vm6, %v2505_v58, %v1220_v15  ;;  %v1114_v47 = vmul.f32 %v2507_v57, %v1113_v27  ;;  %v2513_v55 = vpop.eup %2512  ;;  %vm1146_vm10 = vweird.f32 %v3247_v13 }
 0x2b1   : > { %v1229_v6 = vsel %vm1226_vm7, %v1228_v9, %v1224_v3  ;;  %v1356_v21 = vmul.f32 %v1199_v19, %v3064_v30  ;;  %v1144_v7 = vmul.f32 %v2509_v38, %v1143_v11  ;;  %v1098_v18 = vadd.f32 1.0, %v2513_v55  ;;  %vm1148_vm11 = vmor %vm1146_vm10, %vm1147_vm8  ;;  %v2417_v19 = vld [vmem:[%s3830_s10] sm:$0xff]  ;;  %v2420_v3 = vld [vmem:[%s3830_s10 + $0x18] sm:$0xff] }
 0x2b2   : > { %v1358_v4 = vmul.f32 %v1229_v6, %v3070_v35  ;;  %v1115_v30 = vadd.f32 %v2507_v57, %v1114_v47  ;;  %2514 = vrcp.f32 %v1096_v34  ;;  %vm1121_vm3 = vcmp.eq.f32.partialorder %v1120_v63, 8.507059e+37 }
 0x2b3   : > { %v1145_v46 = vadd.f32 %v2509_v38, %v1144_v7  ;;  %2516 = vrcp.f32 %v1098_v18  ;;  %v1153_v28 = vor.u32 1.1754944e-38, %v1152_v51  ;;  %vm1151_vm12 = vcmp.eq.f32.partialorder %v1150_v40, 8.507059e+37 }
 0x2b4   : > { %v1370_v41 = vpack.c.bf16 %v1358_v4, %v1356_v21  ;;  %v1119_v35 = vsel %vm1118_vm9, %v2507_v57, %v1115_v30  ;;  %v1460_v5 = vpack.c.bf16 %v678_v23, %v678_v23  ;;  %vm3866_vm13 = vcmask 1043456   ;;  %v1465_v21 = vpop.permute.xlu2 %1464 }
 0x2b5   : > { %v1124_v25 = vsel %vm1121_vm3, %v1123_v50, %v1119_v35  ;;  %v1149_v29 = vsel %vm1148_vm11, %v2509_v38, %v1145_v46  ;;  %vm3846_vm14 = vcmask 523264   ;;  %v1137_v37 = vand.u32 2147483648, %v1096_v34  ;;  %vm3867_vm8 = vmmov %vm3866_vm13 }
 0x2b6   : > { %1403 = vmatpush.bf16.msrb.mxu1 %v1370_v41  ;;  %v1351_v33 = vmul.f32 %v1124_v25, %v3176_v44  ;;  %v1154_v53 = vsel %vm1151_vm12, %v1153_v28, %v1149_v29  ;;  %v1535_v58 = vsel %vm3866_vm13, %v1460_v5, 0  ;;  %v1167_v24 = vand.u32 2147483648, %v1098_v18 }
 0x2b7   : > { %v1353_v17 = vmul.f32 %v1154_v53, %v3190_v1  ;;  %v1135_v1 = vand.u32 2147483647, %v1096_v34  ;;  %v1165_v16 = vand.u32 2147483647, %v1098_v18  ;;  %vm1131_vm4 = vweird.f32 %v1096_v34 }
 0x2b8   : > { %v2515_v48 = vpop.eup %2514  ;;  %v692_v39 = vadd.f32 %v691_v32, %v646_v42  ;;  %v1138_v54 = vor.u32 1.1754944e-38, %v1137_v37  ;;  %vm1161_vm6 = vweird.f32 %v1098_v18  ;;  %v1168_v57 = vor.u32 1.1754944e-38, %v1167_v24 }
 0x2b9   : > { %v2517_v36 = vpop.eup %2516  ;;  %v1367_v26 = vpack.c.bf16 %v1353_v17, %v1351_v33  ;;  %v1127_v13 = vmul.f32 %v2515_v48, %v1096_v34  ;;  %vm1132_vm15 = vweird.f32 %v2515_v48  ;;  %vm1136_vm7 = vcmp.eq.f32.partialorder %v1135_v1, 8.507059e+37 }
 0x2ba   : > { %v1157_v10 = vmul.f32 %v2517_v36, %v1098_v18  ;;  %vm1162_vm1 = vweird.f32 %v2517_v36  ;;  %vm1133_vm5 = vmor %vm1131_vm4, %vm1132_vm15  ;;  %vm1166_vm2 = vcmp.eq.f32.partialorder %v1165_v16, 8.507059e+37  ;;  %v1461_v38 = vpack.c.bf16 %v692_v39, %v692_v39 }
 0x2bb   : > { %1391 = vmatpush.bf16.msrb.mxu0 %v1367_v26  ;;  %v1128_v60 = vsub.f32 1.0, %v1127_v13  ;;  %vm1163_vm0 = vmor %vm1161_vm6, %vm1162_vm1  ;;  %vm3868_vm9 = vcmask 64512  }
 0x2bc   : > { %v1158_v44 = vsub.f32 1.0, %v1157_v10  ;;  %v1538_v63 = vsel %vm3867_vm8, %v1461_v38, 0  ;;  %vm3869_vm10 = vmmov %vm3868_vm9  ;;  %v1470_v22 = vpop.permute.xlu2 %1469 }
 0x2bd   : > { %v1129_v52 = vmul.f32 %v2515_v48, %v1128_v60  ;;  %vm3870_vm3 = vmmov %vm3868_vm9 }
 0x2be   : > { %v1159_v0 = vmul.f32 %v2517_v36, %v1158_v44  ;;  %2361 = vmatmul.msk.bf16.vlgmr.msrb.gmra.mxu0 %vm3846_vm14, %v742_v31  ;;  %vm3871_vm11 = vmmov %vm3870_vm3 }
 0x2bf   : > { %1547 = vmatpush.bf16.msra.mxu0 %v1535_v58  ;;  %v1130_v45 = vadd.f32 %v2515_v48, %v1129_v52  ;;  %vm3872_vm12 = vmmov %vm3870_vm3 }
 0x2c0   : > { %v1160_v20 = vadd.f32 %v2517_v36, %v1159_v0  ;;  %vm3873_vm13 = vmmov %vm3870_vm3 }
 0x2c1   : > { %v1134_v56 = vsel %vm1133_vm5, %v2515_v48, %v1130_v45  ;;  %vm3874_vm15 = vmmov %vm3870_vm3 }
 0x2c2   : > { %v1139_v14 = vsel %vm1136_vm7, %v1138_v54, %v1134_v56  ;;  %v1164_v49 = vsel %vm1163_vm0, %v2517_v36, %v1160_v20  ;;  %vm3875_vm1 = vmmov %vm3870_vm3 }
 0x2c3   : > { %v1169_v15 = vsel %vm1166_vm2, %v1168_v57, %v1164_v49  ;;  %v1352_v59 = vmul.f32 %v1139_v14, %v3241_v2  ;;  %v2418_v2 = vld [vmem:[%s3830_s10 + $0x8] sm:$0xff]  ;;  %v1490_v57 = vpop.permute.xlu0 %1489 }
 0x2c4   : > { %v1354_v8 = vmul.f32 %v1169_v15, %v3249_v61  ;;  %v2419_v61 = vld [vmem:[%s3830_s10 + $0x10] sm:$0xff]  ;;  %v1475_v34 = vpop.permute.xlu2 %1474 }
 0x2c6   : > { %v1368_v9 = vpack.c.bf16 %v1354_v8, %v1352_v59 }
 0x2c8   : > { %1404 = vmatpush.bf16.msrb.mxu1 %v1368_v9 }
 0x2cb   : > { %2362 = vmatmul.msk.bf16.vlgmr.msrb.gmra.mxu1 %vm3846_vm14, %v742_v31 }
 0x2cc   : > { %1576 = vmatpush.bf16.msra.mxu1 %v1538_v63  ;;  %v1480_v33 = vpop.permute.xlu2 %1479 }
 0x2ce   : > { %2379 = vmatmul.msk.bf16.vlgmr.msra.gmra.mxu0 %vm3868_vm9, %v2417_v19 }
 0x2d4   : > { %v1485_v52 = vpop.permute.xlu2 %1484 }
 0x2db   : > { %2383 = vmatmul.msk.bf16.vlgmr.msra.gmra.mxu1 %vm3869_vm10, %v2417_v19 }
 0x2de   : > { %2380 = vmatmul.msk.bf16.gmra.mxu0 %vm3870_vm3, %v2418_v2 }
 0x2eb   : > { %2384 = vmatmul.msk.bf16.gmra.mxu1 %vm3871_vm11, %v2418_v2 }
 0x2ee   : > { %2381 = vmatmul.msk.bf16.gmra.mxu0 %vm3872_vm12, %v2419_v61 }
 0x2fb   : > { %2385 = vmatmul.msk.bf16.gmra.mxu1 %vm3873_vm13, %v2419_v61  ;;  %v1495_v61 = vpop.permute.xlu1 %1494 }
 0x2fe   : > { %2382 = vmatmul.msk.bf16.gmra.mxu0 %vm3874_vm15, %v2420_v3 }
 0x30b   : > { %2386 = vmatmul.msk.bf16.gmra.mxu1 %vm3875_vm1, %v2420_v3 }
 0x33b   : > { %v3306_v27 = vpop.f32.mrf.mxu0 }
 0x343   : > { %v1395_v62 = vpop.f32.mrf.mxu0 }
 0x348   : > { %v3308_v43 = vpop.f32.mrf.mxu1 }
 0x34b   : > { %v1549_v6 = vpop.f32.mrf.mxu0 }
 0x34c   : > { %v3310_v55 = vadd.f32 %v1549_v6, %v1465_v21 }
 0x34e   : > { %v1631_v30 = vmul.f32 %v3310_v55, %v3310_v55 }
 0x350   : > { %v1408_v12 = vpop.f32.mrf.mxu1 }
 0x353   : > { %v1551_v42 = vpop.f32.mrf.mxu0 }
 0x354   : > { %v3314_v41 = vadd.f32 %v1551_v42, %v1470_v22 }
 0x356   : > { %v1633_v50 = vmul.f32 %v3314_v41, %v3314_v41 }
 0x358   : > { %v1578_v4 = vpop.f32.mrf.mxu1 }
 0x359   : > { %v3312_v40 = vadd.f32 %v1578_v4, %v1465_v21 }
 0x35b   : > { %v1554_v47 = vpop.f32.mrf.mxu0  ;;  %v1632_v7 = vmul.f32 %v3312_v40, %v3312_v40  ;;  %v1598_v23 = vadd.f32 %v3312_v40, %v3310_v55 }
 0x35c   : > { %v3327_v28 = vadd.f32 %v1554_v47, %v1475_v34 }
 0x35d   : > { %v1647_v35 = vadd.f32 %v1632_v7, %v1631_v30  ;;  %v1599_v46 = vadd.f32 %v1598_v23, %v3314_v41 }
 0x35e   : > { %v1635_v48 = vmul.f32 %v3327_v28, %v3327_v28 }
 0x35f   : > { %v1648_v53 = vadd.f32 %v1647_v35, %v1633_v50 }
 0x360   : > { %v1580_v11 = vpop.f32.mrf.mxu1 }
 0x361   : > { %v3325_v25 = vadd.f32 %v1580_v11, %v1470_v22  ;;  %v1500_v11 = vpop.permute.xlu2 %1499 }
 0x363   : > { %v1556_v51 = vpop.f32.mrf.mxu0  ;;  %v1600_v5 = vadd.f32 %v1599_v46, %v3325_v25  ;;  %v1634_v17 = vmul.f32 %v3325_v25, %v3325_v25 }
 0x364   : > { %v3337_v58 = vadd.f32 %v1556_v51, %v1480_v33 }
 0x365   : > { %v1649_v26 = vadd.f32 %v1648_v53, %v1634_v17  ;;  %v1601_v13 = vadd.f32 %v1600_v5, %v3327_v28 }
 0x366   : > { %v1637_v32 = vmul.f32 %v3337_v58, %v3337_v58 }
 0x367   : > { %v1650_v60 = vadd.f32 %v1649_v26, %v1635_v48 }
 0x368   : > { %v1583_v18 = vpop.f32.mrf.mxu1 }
 0x369   : > { %v3335_v10 = vadd.f32 %v1583_v18, %v1475_v34 }
 0x36b   : > { %v1559_v29 = vpop.f32.mrf.mxu0  ;;  %v1602_v37 = vadd.f32 %v1601_v13, %v3335_v10  ;;  %v1636_v44 = vmul.f32 %v3335_v10, %v3335_v10  ;;  %v2163_v13 = vld [vmem:[%s3837_s17] sm:$0xf] }
 0x36c   : > { %v3347_v16 = vadd.f32 %v1559_v29, %v1485_v52 }
 0x36d   : > { %v1651_v1 = vadd.f32 %v1650_v60, %v1636_v44  ;;  %v1603_v24 = vadd.f32 %v1602_v37, %v3337_v58 }
 0x36e   : > { %v1639_v56 = vmul.f32 %v3347_v16, %v3347_v16 }
 0x36f   : > { %v1652_v39 = vadd.f32 %v1651_v1, %v1637_v32 }
 0x370   : > { %v1585_v36 = vpop.f32.mrf.mxu1 }
 0x371   : > { %v3345_v0 = vadd.f32 %v1585_v36, %v1480_v33 }
 0x373   : > { %v1561_v31 = vpop.f32.mrf.mxu0  ;;  %v1604_v54 = vadd.f32 %v1603_v24, %v3345_v0  ;;  %v1638_v20 = vmul.f32 %v3345_v0, %v3345_v0 }
 0x374   : > { %v3357_v38 = vadd.f32 %v1561_v31, %v1490_v57 }
 0x375   : > { %v1653_v49 = vadd.f32 %v1652_v39, %v1638_v20  ;;  %v1605_v15 = vadd.f32 %v1604_v54, %v3347_v16 }
 0x376   : > { %v1641_v2 = vmul.f32 %v3357_v38, %v3357_v38 }
 0x377   : > { %v1654_v8 = vadd.f32 %v1653_v49, %v1639_v56 }
 0x378   : > { %v1588_v45 = vpop.f32.mrf.mxu1 }
 0x379   : > { %v3355_v59 = vadd.f32 %v1588_v45, %v1485_v52 }
 0x37b   : > { %v1564_v14 = vpop.f32.mrf.mxu0  ;;  %v1606_v63 = vadd.f32 %v1605_v15, %v3355_v59  ;;  %v1640_v19 = vmul.f32 %v3355_v59, %v3355_v59 }
 0x37c   : > { %v3367_v21 = vadd.f32 %v1564_v14, %v1495_v61 }
 0x37d   : > { %v1655_v3 = vadd.f32 %v1654_v8, %v1640_v19  ;;  %v1607_v62 = vadd.f32 %v1606_v63, %v3357_v38 }
 0x37e   : > { %v1643_v47 = vmul.f32 %v3367_v21, %v3367_v21 }
 0x37f   : > { %v1656_v12 = vadd.f32 %v1655_v3, %v1641_v2 }
 0x380   : > { %v1590_v9 = vpop.f32.mrf.mxu1 }
 0x381   : > { %v3365_v6 = vadd.f32 %v1590_v9, %v1490_v57 }
 0x383   : > { %v1566_v42 = vpop.f32.mrf.mxu0  ;;  %v1608_v22 = vadd.f32 %v1607_v62, %v3365_v6  ;;  %v1642_v4 = vmul.f32 %v3365_v6, %v3365_v6  ;;  %v1438_v62 = vld [vmem:[%s3832_s12 + $0x60] sm:$0xff] }
 0x384   : > { %v3377_v18 = vadd.f32 %v1566_v42, %v1500_v11 }
 0x385   : > { %v1657_v51 = vadd.f32 %v1656_v12, %v1642_v4  ;;  %v1609_v30 = vadd.f32 %v1608_v22, %v3367_v21  ;;  %v1440_v12 = vld [vmem:[%s3832_s12 + $0x70] sm:$0xff] }
 0x386   : > { %v1645_v46 = vmul.f32 %v3377_v18, %v3377_v18 }
 0x387   : > { %v1658_v23 = vadd.f32 %v1657_v51, %v1643_v47  ;;  %v1441_v51 = vld [vmem:[%s3832_s12 + $0x78] sm:$0xff] }
 0x388   : > { %v1593_v34 = vpop.f32.mrf.mxu1 }
 0x389   : > { %v3375_v7 = vadd.f32 %v1593_v34, %v1495_v61  ;;  %v1439_v34 = vld [vmem:[%s3832_s12 + $0x68] sm:$0xff] }
 0x38b   : > { %v1610_v50 = vadd.f32 %v1609_v30, %v3375_v7  ;;  %v1644_v35 = vmul.f32 %v3375_v7, %v3375_v7 }
 0x38d   : > { %v1611_v29 = vadd.f32 %v1610_v50, %v3377_v18  ;;  %v1659_v33 = vadd.f32 %v1658_v23, %v1644_v35 }
 0x38f   : > { %v1660_v17 = vadd.f32 %v1659_v33, %v1645_v46  ;;  %v1434_v46 = vld [vmem:[%s3832_s12 + $0x40] sm:$0xff]  ;;  %v1457_v33 = vld [vmem:[%s3833_s13 + $0x78] sm:$0xff] }
 0x390   : > { %v1595_v53 = vpop.f32.mrf.mxu1 }
 0x391   : > { %v3385_v5 = vadd.f32 %v1595_v53, %v1500_v11  ;;  %v1454_v11 = vld [vmem:[%s3833_s13 + $0x60] sm:$0xff] }
 0x393   : > { %v1612_v48 = vadd.f32 %v1611_v29, %v3385_v5  ;;  %v1646_v36 = vmul.f32 %v3385_v5, %v3385_v5  ;;  %v1455_v29 = vld [vmem:[%s3833_s13 + $0x68] sm:$0xff] }
 0x395   : > { %1613 = vadd.xlane.f32.xlu2 %v1612_v48  ;;  %v1661_v26 = vadd.f32 %v1660_v17, %v1646_v36 }
 0x397   : > { %1662 = vadd.xlane.f32.xlu0 %v1661_v26 }
 0x3ad   : > { %2166 = vperm.xlu2 %2449, %v2163_v13  }
 0x408   : > { %v1614_v60 = vpop.xlane.xlu2 %1613 }
 0x409   : > { %v1615_v31 = vrot.slane %v1614_v60, 4 }
 0x40a   : > { %v1663_v37 = vpop.xlane.xlu0 %1662 }
 0x40b   : > { %v1616_v44 = vadd.f32 %v1615_v31, %v1614_v60  ;;  %v1664_v32 = vrot.slane %v1663_v37, 4  ;;  %v1450_v31 = vld [vmem:[%s3833_s13 + $0x40] sm:$0xff] }
 0x40d   : > { %v1617_v52 = vrot.slane %v1616_v44, 2  ;;  %v1665_v1 = vadd.f32 %v1664_v32, %v1663_v37  ;;  %v1452_v37 = vld [vmem:[%s3833_s13 + $0x50] sm:$0xff] }
 0x40f   : > { %v1666_v24 = vrot.slane %v1665_v1, 2  ;;  %v1618_v45 = vadd.f32 %v1617_v52, %v1616_v44 }
 0x411   : > { %v1667_v39 = vadd.f32 %v1666_v24, %v1665_v1  ;;  %v1619_v54 = vrot.slane %v1618_v45, 1 }
 0x413   : > { %v1620_v20 = vadd.f32 %v1619_v54, %v1618_v45  ;;  %v1668_v56 = vrot.slane %v1667_v39, 1  ;;  %v1437_v54 = vld [vmem:[%s3832_s12 + $0x58] sm:$0xff] }
 0x415   : > { %2429 = vpush %v1620_v20  ;;  %v1669_v57 = vadd.f32 %v1668_v56, %v1667_v39 }
 0x417   : > { %2431 = vpush %v1669_v57  ;;  %v1451_v57 = vld [vmem:[%s3833_s13 + $0x48] sm:$0xff] }
 0x446   : > { %s2430_s22 = spop %2429 }
 0x447   : > { %s1630_s24 = smul.f32 %s2430_s22, %s2885_s21  ;;  %s3794_s22 = scalar_lea.vmem %s3890_s2, %s2410_s20 }
 0x448   : > { %s2432_s25 = spop %2431  ;;  %s631_s20 = scalar_lea.vmem %s3839_s19, %s3898_s30 }
 0x449   : > { %s1680_s3 = smul.f32 %s1630_s24, %s1630_s24  ;;  %v3395_v61 = vstv %s1630_s24 }
 0x44a   : > { %s1679_s26 = smul.f32 %s2432_s25, %s2885_s21  ;;  %v1695_v3 = vsub.f32 %v3367_v21, %v3395_v61  ;;  %v1697_v42 = vsub.f32 %v3377_v18, %v3395_v61  ;;  %v1696_v22 = vsub.f32 %v3375_v7, %v3395_v61  ;;  %v1698_v4 = vsub.f32 %v3385_v5, %v3395_v61 }
 0x44b   : > { %v1691_v21 = vsub.f32 %v3347_v16, %v3395_v61  ;;  %v1693_v30 = vsub.f32 %v3357_v38, %v3395_v61  ;;  %v1692_v16 = vsub.f32 %v3355_v59, %v3395_v61  ;;  %v1694_v7 = vsub.f32 %v3365_v6, %v3395_v61  ;;  %v1436_v38 = vld [vmem:[%s3832_s12 + $0x50] sm:$0xff]  ;;  %v1435_v59 = vld [vmem:[%s3832_s12 + $0x48] sm:$0xff] }
 0x44c   : > { %s1681_s28 = ssub.f32 %s1679_s26, %s1680_s3  ;;  %v1456_v6 = vld [vmem:[%s3833_s13 + $0x70] sm:$0xff]  ;;  %v1687_v48 = vsub.f32 %v3327_v28, %v3395_v61  ;;  %s3895_s3 = sshll.u32 %s3898_s30, 2 }
 0x44e   : > { %s1699_s27 = sadd.f32 1e-05, %s1681_s28 }
 0x450   : > { %v1700_v14 = vstv %s1699_s27  ;;  %s628_s27 = scalar_lea.vmem %s3838_s18, %s3895_s3 }
 0x451   : > { %2518 = vrsqrt.f32 %v1700_v14  ;;  %vm1707_vm5 = vweird.f32 %v1700_v14 }
 0x457   : > { %v2519_v49 = vpop.eup %2518 }
 0x458   : > { %v1702_v15 = vmul.f32 %v2519_v49, %v1700_v14  ;;  %vm1708_vm4 = vweird.f32 %v2519_v49  ;;  %v1430_v14 = vld [vmem:[%s3832_s12 + $0x20] sm:$0xff] }
 0x459   : > { %vm1709_vm6 = vmor %vm1707_vm5, %vm1708_vm4 }
 0x45a   : > { %v1703_v8 = vmul.f32 %v2519_v49, %v1702_v15 }
 0x45c   : > { %v1704_v9 = vmul.f32 0.5, %v1703_v8 }
 0x45e   : > { %v1705_v63 = vsub.f32 1.5, %v1704_v9 }
 0x460   : > { %v1706_v19 = vmul.f32 %v2519_v49, %v1705_v63 }
 0x462   : > { %v1710_v2 = vsel %vm1709_vm6, %v2519_v49, %v1706_v19  ;;  %v1689_v49 = vsub.f32 %v3337_v58, %v3395_v61  ;;  %v1453_v58 = vld [vmem:[%s3833_s13 + $0x58] sm:$0xff] }
 0x463   : > { %2433 = vpush %v1710_v2 }
 0x494   : > { %s2434_s21 = spop %2433 }
 0x495   : > { %v3413_v47 = vstv %s2434_s21 }
 0x496   : > { %v1725_v18 = vmul.f32 %v3413_v47, %v1695_v3  ;;  %v1727_v23 = vmul.f32 %v3413_v47, %v1697_v42  ;;  %v1726_v50 = vmul.f32 %v3413_v47, %v1696_v22  ;;  %v1728_v35 = vmul.f32 %v3413_v47, %v1698_v4  ;;  %v1432_v42 = vld [vmem:[%s3832_s12 + $0x30] sm:$0xff] }
 0x497   : > { %v1721_v53 = vmul.f32 %v3413_v47, %v1691_v21  ;;  %v1723_v5 = vmul.f32 %v3413_v47, %v1693_v30  ;;  %v1722_v17 = vmul.f32 %v3413_v47, %v1692_v16  ;;  %v1724_v52 = vmul.f32 %v3413_v47, %v1694_v7  ;;  %v1446_v21 = vld [vmem:[%s3833_s13 + $0x20] sm:$0xff]  ;;  %v1448_v16 = vld [vmem:[%s3833_s13 + $0x30] sm:$0xff] }
 0x498   : > { %v1741_v36 = vmul.f32 %v1725_v18, %v1438_v62  ;;  %v1743_v26 = vmul.f32 %v1727_v23, %v1440_v12  ;;  %v1742_v13 = vmul.f32 %v1726_v50, %v1439_v34  ;;  %v1744_v60 = vmul.f32 %v1728_v35, %v1441_v51 }
 0x499   : > { %v1737_v44 = vmul.f32 %v1721_v53, %v1434_v46  ;;  %v1739_v32 = vmul.f32 %v1723_v5, %v1436_v38  ;;  %v1738_v1 = vmul.f32 %v1722_v17, %v1435_v59  ;;  %v1717_v63 = vmul.f32 %v3413_v47, %v1687_v48 }
 0x49a   : > { %v3464_v24 = vadd.f32 %v1741_v36, %v1454_v11  ;;  %v3466_v28 = vadd.f32 %v1743_v26, %v1456_v6  ;;  %v3468_v45 = vadd.f32 %v1742_v13, %v1455_v29  ;;  %v3470_v39 = vadd.f32 %v1744_v60, %v1457_v33  ;;  %v1447_v60 = vld [vmem:[%s3833_s13 + $0x28] sm:$0xff] }
 0x49b   : > { %v3475_v20 = vadd.f32 %v1737_v44, %v1450_v31  ;;  %v3477_v56 = vadd.f32 %v1739_v32, %v1452_v37  ;;  %v1740_v2 = vmul.f32 %v1724_v52, %v1437_v54  ;;  %v1719_v3 = vmul.f32 %v3413_v47, %v1689_v49  ;;  %v1449_v54 = vld [vmem:[%s3833_s13 + $0x38] sm:$0xff] }
 0x49c   : > { %v2399_v15 = vmul.f32 -1.442695, %v3464_v24  ;;  %v2401_v8 = vmul.f32 -1.442695, %v3466_v28  ;;  %v2400_v9 = vmul.f32 -1.442695, %v3468_v45  ;;  %v3497_v12 = vadd.f32 %v1738_v1, %v1451_v57 }
 0x49d   : > { %v2402_v19 = vmul.f32 -1.442695, %v3470_v39  ;;  %v2395_v62 = vmul.f32 -1.442695, %v3475_v20  ;;  %v1733_v22 = vmul.f32 %v1717_v63, %v1430_v14  ;;  %v2397_v4 = vmul.f32 -1.442695, %v3477_v56 }
 0x49e   : > { %2520 = vpow2.f32 %v2399_v15  ;;  %v3506_v11 = vadd.f32 %v1740_v2, %v1453_v58  ;;  %v1735_v34 = vmul.f32 %v1719_v3, %v1432_v42  ;;  %v1688_v51 = vsub.f32 %v3335_v10, %v3395_v61  ;;  %v1431_v10 = vld [vmem:[%s3832_s12 + $0x28] sm:$0xff] }
 0x49f   : > { %2522 = vpow2.f32 %v2401_v8  ;;  %v2396_v30 = vmul.f32 -1.442695, %v3497_v12  ;;  %v3514_v7 = vadd.f32 %v1733_v22, %v1446_v21  ;;  %v1690_v18 = vsub.f32 %v3345_v0, %v3395_v61  ;;  %v1433_v0 = vld [vmem:[%s3832_s12 + $0x38] sm:$0xff] }
 0x4a0   : > { %2524 = vpow2.f32 %v2400_v9  ;;  %v1718_v23 = vmul.f32 %v3413_v47, %v1688_v51  ;;  %v2398_v59 = vmul.f32 -1.442695, %v3506_v11  ;;  %v3526_v6 = vadd.f32 %v1735_v34, %v1448_v16 }
 0x4a1   : > { %2526 = vpow2.f32 %v2402_v19  ;;  %v1720_v35 = vmul.f32 %v3413_v47, %v1690_v18  ;;  %v1683_v29 = vsub.f32 %v3310_v55, %v3395_v61  ;;  %v2391_v5 = vmul.f32 -1.442695, %v3514_v7 }
 0x4a2   : > { %2528 = vpow2.f32 %v2395_v62  ;;  %v1685_v17 = vsub.f32 %v3314_v41, %v3395_v61  ;;  %v1734_v36 = vmul.f32 %v1718_v23, %v1431_v10  ;;  %v1684_v26 = vsub.f32 %v3312_v40, %v3395_v61 }
 0x4a3   : > { %2530 = vpow2.f32 %v2397_v4  ;;  %v1686_v13 = vsub.f32 %v3325_v25, %v3395_v61  ;;  %v1736_v31 = vmul.f32 %v1720_v35, %v1433_v0  ;;  %v3548_v41 = vmul.f32 %v3413_v47, %v1683_v29 }
 0x4a4   : > { %v2521_v50 = vpop.eup %2520  ;;  %2532 = vpow2.f32 %v2396_v30  ;;  %v3551_v37 = vmul.f32 %v3413_v47, %v1685_v17  ;;  %v3558_v1 = vmul.f32 -1.442695, %v3526_v6  ;;  %v3570_v9 = vadd.f32 %v1734_v36, %v1447_v60 }
 0x4a5   : > { %v2523_v46 = vpop.eup %2522  ;;  %v3523_v38 = vadd.f32 1.0, %v2521_v50  ;;  %v3576_v3 = vadd.f32 %v1736_v31, %v1449_v54  ;;  %v1716_v40 = vmul.f32 %v3413_v47, %v1686_v13 }
 0x4a6   : > { %v2525_v33 = vpop.eup %2524  ;;  %v3533_v53 = vadd.f32 1.0, %v2523_v46 }
 0x4a7   : > { %v2527_v48 = vpop.eup %2526  ;;  %2534 = vrcp.f32 %v3523_v38  ;;  %v3553_v32 = vadd.f32 1.0, %v2525_v33  ;;  %v2014_v57 = vand.u32 2147483647, %v3523_v38  ;;  %v2016_v14 = vand.u32 2147483648, %v3523_v38 }
 0x4a8   : > { %v2529_v55 = vpop.eup %2528  ;;  %2536 = vrcp.f32 %v3533_v53  ;;  %v3555_v52 = vadd.f32 1.0, %v2527_v48  ;;  %v2044_v15 = vand.u32 2147483647, %v3533_v53  ;;  %v2046_v8 = vand.u32 2147483648, %v3533_v53 }
 0x4a9   : > { %v2531_v44 = vpop.eup %2530  ;;  %2538 = vpow2.f32 %v2398_v59  ;;  %v3565_v49 = vadd.f32 1.0, %v2529_v55  ;;  %v2031_v19 = vand.u32 2147483648, %v3553_v32  ;;  %vm2010_vm7 = vweird.f32 %v3523_v38 }
 0x4aa   : > { %2540 = vpow2.f32 %v2391_v5  ;;  %v2533_v63 = vpop.eup %2532  ;;  %v3574_v2 = vadd.f32 1.0, %v2531_v44  ;;  %vm2040_vm0 = vweird.f32 %v3533_v53  ;;  %v2061_v58 = vand.u32 2147483648, %v3555_v52 }
 0x4ab   : > { %2542 = vrcp.f32 %v3553_v32  ;;  %vm3583_vm2 = vcmp.eq.f32.partialorder %v2014_v57, 8.507059e+37  ;;  %v2017_v21 = vor.u32 1.1754944e-38, %v2016_v14  ;;  %v2029_v34 = vand.u32 2147483647, %v3553_v32 }
 0x4ac   : > { %2544 = vrcp.f32 %v3555_v52  ;;  %vm3589_vm8 = vcmp.eq.f32.partialorder %v2044_v15, 8.507059e+37  ;;  %v2047_v18 = vor.u32 1.1754944e-38, %v2046_v8  ;;  %v2059_v23 = vand.u32 2147483647, %v3555_v52 }
 0x4ad   : > { %v2535_v62 = vpop.eup %2534  ;;  %2546 = vrcp.f32 %v3565_v49  ;;  %v1956_v50 = vand.u32 2147483648, %v3565_v49  ;;  %vm2025_vm10 = vweird.f32 %v3553_v32  ;;  %v2032_v46 = vor.u32 1.1754944e-38, %v2031_v19 }
 0x4ae   : > { %v2537_v42 = vpop.eup %2536  ;;  %v2006_v22 = vmul.f32 %v2535_v62, %v3523_v38  ;;  %vm2011_vm9 = vweird.f32 %v2535_v62  ;;  %2548 = vrcp.f32 %v3574_v2  ;;  %vm2055_vm11 = vweird.f32 %v3555_v52 }
 0x4af   : > { %v2539_v51 = vpop.eup %2538  ;;  %v2036_v30 = vmul.f32 %v2537_v42, %v3533_v53  ;;  %vm2041_vm3 = vweird.f32 %v2537_v42  ;;  %v2062_v29 = vor.u32 1.1754944e-38, %v2061_v58  ;;  %v1954_v33 = vand.u32 2147483647, %v3565_v49  ;;  %vm2012_vm5 = vmor %vm2010_vm7, %vm2011_vm9 }
 0x4b0   : > { %v3595_v10 = vpop.eup %2540  ;;  %v2007_v35 = vsub.f32 1.0, %v2006_v22  ;;  %vm3602_vm12 = vcmp.eq.f32.partialorder %v2029_v34, 8.507059e+37  ;;  %vm1950_vm13 = vweird.f32 %v3565_v49  ;;  %v1957_v55 = vor.u32 1.1754944e-38, %v1956_v50  ;;  %vm2042_vm14 = vmor %vm2040_vm0, %vm2041_vm3 }
 0x4b1   : > { %v2543_v59 = vpop.eup %2542  ;;  %v2037_v0 = vsub.f32 1.0, %v2036_v30  ;;  %v1984_v60 = vand.u32 2147483647, %v3574_v2  ;;  %vm3609_vm1 = vcmp.eq.f32.partialorder %v2059_v23, 8.507059e+37  ;;  %v1986_v14 = vand.u32 2147483648, %v3574_v2 }
 0x4b2   : > { %v2545_v5 = vpop.eup %2544  ;;  %v2008_v17 = vmul.f32 %v2535_v62, %v2007_v35  ;;  %v2021_v48 = vmul.f32 %v2543_v59, %v3553_v32  ;;  %vm2026_vm15 = vweird.f32 %v2543_v59  ;;  %v3618_v34 = vadd.f32 1.0, %v2533_v63 }
 0x4b3   : > { %v2547_v31 = vpop.eup %2546  ;;  %v2038_v44 = vmul.f32 %v2537_v42, %v2037_v0  ;;  %v2051_v54 = vmul.f32 %v2545_v5, %v3555_v52  ;;  %vm2056_vm4 = vweird.f32 %v2545_v5  ;;  %2550 = vpow2.f32 %v3558_v1  ;;  %vm2027_vm7 = vmor %vm2025_vm10, %vm2026_vm15 }
 0x4b4   : > { %v2009_v15 = vadd.f32 %v2535_v62, %v2008_v17  ;;  %v2022_v8 = vsub.f32 1.0, %v2021_v48  ;;  %v1946_v19 = vmul.f32 %v2547_v31, %v3565_v49  ;;  %vm1951_vm6 = vweird.f32 %v2547_v31  ;;  %v2549_v30 = vpop.eup %2548 }
 0x4b5   : > { %v2039_v58 = vadd.f32 %v2537_v42, %v2038_v44  ;;  %v2052_v22 = vsub.f32 1.0, %v2051_v54  ;;  %v1976_v48 = vmul.f32 %v2549_v30, %v3574_v2  ;;  %vm1981_vm0 = vweird.f32 %v2549_v30 }
 0x4b6   : > { %v2013_v23 = vsel %vm2012_vm5, %v2535_v62, %v2009_v15  ;;  %v2023_v50 = vmul.f32 %v2543_v59, %v2022_v8  ;;  %v1947_v35 = vsub.f32 1.0, %v1946_v19  ;;  %2552 = vrcp.f32 %v3618_v34 }
 0x4b7   : > { %v2018_v0 = vsel %vm3583_vm2, %v2017_v21, %v2013_v23  ;;  %v2043_v38 = vsel %vm2042_vm14, %v2537_v42, %v2039_v58  ;;  %v2053_v17 = vmul.f32 %v2545_v5, %v2052_v22  ;;  %v1977_v4 = vsub.f32 1.0, %v1976_v48  ;;  %vm2057_vm14 = vmor %vm2055_vm11, %vm2056_vm4  ;;  %v1442_v58 = vld [vmem:[%s3833_s13] sm:$0xff] }
 0x4b8   : > { %v2048_v63 = vsel %vm3589_vm8, %v2047_v18, %v2043_v38  ;;  %v2077_v62 = vmul.f32 %v2018_v0, %v3464_v24  ;;  %v2024_v44 = vadd.f32 %v2543_v59, %v2023_v50  ;;  %v1948_v54 = vmul.f32 %v2547_v31, %v1947_v35  ;;  %vm1952_vm2 = vmor %vm1950_vm13, %vm1951_vm6 }
 0x4b9   : > { %v2079_v53 = vmul.f32 %v2048_v63, %v3466_v28  ;;  %v2054_v1 = vadd.f32 %v2545_v5, %v2053_v17  ;;  %v3634_v21 = vadd.f32 1.0, %v2539_v51  ;;  %v1978_v32 = vmul.f32 %v2549_v30, %v1977_v4  ;;  %v1426_v51 = vld [vmem:[%s3832_s12] sm:$0xff]  ;;  %v2551_v52 = vpop.eup %2550 }
 0x4ba   : > { %v2028_v42 = vsel %vm2027_vm7, %v2543_v59, %v2024_v44  ;;  %v1949_v16 = vadd.f32 %v2547_v31, %v1948_v54  ;;  %vm1955_vm8 = vcmp.eq.f32.partialorder %v1954_v33, 8.507059e+37  ;;  %vm1980_vm9 = vweird.f32 %v3574_v2 }
 0x4bb   : > { %v2087_v24 = vpack.c.bf16 %v2079_v53, %v2077_v62  ;;  %v2033_v28 = vsel %vm3602_vm12, %v2032_v46, %v2028_v42  ;;  %v2058_v18 = vsel %vm2057_vm14, %v2545_v5, %v2054_v1  ;;  %v1979_v36 = vadd.f32 %v2549_v30, %v1978_v32  ;;  %vm1982_vm10 = vmor %vm1980_vm9, %vm1981_vm0 }
 0x4bc   : > { %v2063_v59 = vsel %vm3609_vm1, %v2062_v29, %v2058_v18  ;;  %v2078_v15 = vmul.f32 %v2033_v28, %v3468_v45  ;;  %v1953_v8 = vsel %vm1952_vm2, %v2547_v31, %v1949_v16  ;;  %vm1985_vm3 = vcmp.eq.f32.partialorder %v1984_v60, 8.507059e+37  ;;  %v1428_v29 = vld [vmem:[%s3832_s12 + $0x10] sm:$0xff]  ;;  %v2553_v57 = vpop.eup %2552 }
 0x4bd   : > { %2101 = vmatpush.bf16.msrb.mxu2 %v2087_v24  ;;  %v2080_v46 = vmul.f32 %v2063_v59, %v3470_v39  ;;  %v1958_v5 = vsel %vm1955_vm8, %v1957_v55, %v1953_v8  ;;  %v1987_v49 = vor.u32 1.1754944e-38, %v1986_v14  ;;  %2554 = vrcp.f32 %v3634_v21 }
 0x4be   : > { %v1729_v45 = vmul.f32 %v3548_v41, %v1426_v51  ;;  %v1983_v31 = vsel %vm1982_vm10, %v2549_v30, %v1979_v36  ;;  %v2073_v39 = vmul.f32 %v1958_v5, %v3475_v20  ;;  %v1969_v55 = vand.u32 2147483647, %v3618_v34 }
 0x4bf   : > { %v2088_v33 = vpack.c.bf16 %v2080_v46, %v2078_v15  ;;  %v1988_v2 = vsel %vm1985_vm3, %v1987_v49, %v1983_v31  ;;  %v1971_v19 = vand.u32 2147483648, %v3618_v34  ;;  %v3663_v60 = vadd.f32 1.0, %v3595_v10 }
 0x4c0   : > { %v3665_v14 = vadd.f32 1.0, %v2551_v52  ;;  %v2075_v41 = vmul.f32 %v1988_v2, %v3477_v56  ;;  %v1961_v20 = vmul.f32 %v2553_v57, %v3618_v34  ;;  %v1999_v22 = vand.u32 2147483647, %v3634_v21  ;;  %v1444_v56 = vld [vmem:[%s3833_s13 + $0x10] sm:$0xff] }
 0x4c1   : > { %2114 = vmatpush.bf16.msrb.mxu3 %v2088_v33  ;;  %v1731_v30 = vmul.f32 %v3551_v37, %v1428_v29  ;;  %v2001_v23 = vand.u32 2147483648, %v3634_v21  ;;  %2556 = vrcp.f32 %v3663_v60  ;;  %v2392_v10 = vmul.f32 -1.442695, %v3570_v9  ;;  %v1427_v29 = vld [vmem:[%s3832_s12 + $0x8] sm:$0xff] }
 0x4c2   : > { %v2394_v50 = vmul.f32 -1.442695, %v3576_v3  ;;  %v2085_v35 = vpack.c.bf16 %v2075_v41, %v2073_v39  ;;  %v1962_v0 = vsub.f32 1.0, %v1961_v20  ;;  %2558 = vrcp.f32 %v3665_v14 }
 0x4c3   : > { %v3682_v38 = vadd.f32 %v1729_v45, %v1442_v58  ;;  %v2555_v17 = vpop.eup %2554  ;;  %vm1965_vm11 = vweird.f32 %v3618_v34  ;;  %vm3685_vm12 = vcmp.eq.f32.partialorder %v1969_v55, 8.507059e+37  ;;  %v1972_v48 = vor.u32 1.1754944e-38, %v1971_v19  ;;  %v1429_v58 = vld [vmem:[%s3832_s12 + $0x18] sm:$0xff] }
 0x4c4   : > { %vm1995_vm13 = vweird.f32 %v3634_v21  ;;  %2102 = vmatpush.bf16.msrb.mxu2 %v2085_v35  ;;  %v1963_v63 = vmul.f32 %v2553_v57, %v1962_v0  ;;  %vm1966_vm15 = vweird.f32 %v2553_v57  ;;  %v1991_v62 = vmul.f32 %v2555_v17, %v3634_v21 }
 0x4c5   : > { %vm3691_vm1 = vcmp.eq.f32.partialorder %v1999_v22, 8.507059e+37  ;;  %v2002_v54 = vor.u32 1.1754944e-38, %v2001_v23  ;;  %v1894_v53 = vand.u32 2147483647, %v3663_v60  ;;  %2560 = vpow2.f32 %v2392_v10  ;;  %vm1967_vm4 = vmor %vm1965_vm11, %vm1966_vm15 }
 0x4c6   : > { %v3696_v1 = vadd.f32 %v1731_v30, %v1444_v56  ;;  %v1964_v4 = vadd.f32 %v2553_v57, %v1963_v63  ;;  %v1992_v42 = vsub.f32 1.0, %v1991_v62  ;;  %2562 = vpow2.f32 %v2394_v50 }
 0x4c7   : > { %v2387_v16 = vmul.f32 -1.442695, %v3682_v38  ;;  %v2557_v24 = vpop.eup %2556  ;;  %vm1890_vm5 = vweird.f32 %v3663_v60  ;;  %v1896_v28 = vand.u32 2147483648, %v3663_v60  ;;  %v1924_v18 = vand.u32 2147483647, %v3665_v14 }
 0x4c8   : > { %v2389_v32 = vmul.f32 -1.442695, %v3696_v1  ;;  %v2559_v51 = vpop.eup %2558  ;;  %v1968_v52 = vsel %vm1967_vm4, %v2553_v57, %v1964_v4  ;;  %v1993_v59 = vmul.f32 %v2555_v17, %v1992_v42  ;;  %vm1996_vm6 = vweird.f32 %v2555_v17 }
 0x4c9   : > { %v1886_v15 = vmul.f32 %v2557_v24, %v3663_v60  ;;  %v1973_v8 = vsel %vm3685_vm12, %v1972_v48, %v1968_v52  ;;  %v1916_v34 = vmul.f32 %v2559_v51, %v3665_v14  ;;  %2564 = vpow2.f32 %v2387_v16  ;;  %vm1997_vm7 = vmor %vm1995_vm13, %vm1996_vm6  ;;  %v1445_v60 = vld [vmem:[%s3833_s13 + $0x18] sm:$0xff] }
 0x4ca   : > { %v1714_v46 = vmul.f32 %v3413_v47, %v1684_v26  ;;  %v1994_v5 = vadd.f32 %v2555_v17, %v1993_v59  ;;  %v1926_v49 = vand.u32 2147483648, %v3665_v14  ;;  %2566 = vpow2.f32 %v2389_v32 }
 0x4cb   : > { %v1887_v36 = vsub.f32 1.0, %v1886_v15  ;;  %v2561_v45 = vpop.eup %2560  ;;  %vm1891_vm14 = vweird.f32 %v2557_v24  ;;  %v1917_v33 = vsub.f32 1.0, %v1916_v34  ;;  %vm1921_vm0 = vweird.f32 %v2559_v51 }
 0x4cc   : > { %v2563_v26 = vpop.eup %2562  ;;  %v1998_v31 = vsel %vm1997_vm7, %v2555_v17, %v1994_v5  ;;  %v2074_v39 = vmul.f32 %v1973_v8, %v3497_v12  ;;  %v3724_v57 = vadd.f32 1.0, %v2561_v45  ;;  %v1730_v25 = vmul.f32 %v1714_v46, %v1427_v29  ;;  %v1443_v12 = vld [vmem:[%s3833_s13 + $0x8] sm:$0xff]  ;;  %vm1892_vm8 = vmor %vm1890_vm5, %vm1891_vm14 }
 0x4cd   : > { %v1888_v55 = vmul.f32 %v2557_v24, %v1887_v36  ;;  %v2003_v2 = vsel %vm3691_vm1, %v2002_v54, %v1998_v31  ;;  %v1918_v21 = vmul.f32 %v2559_v51, %v1917_v33  ;;  %v3728_v19 = vadd.f32 1.0, %v2563_v26 }
 0x4ce   : > { %v2076_v61 = vmul.f32 %v2003_v2, %v3506_v11  ;;  %vm1895_vm2 = vcmp.eq.f32.partialorder %v1894_v53, 8.507059e+37  ;;  %2568 = vrcp.f32 %v3724_v57  ;;  %v1897_v41 = vor.u32 1.1754944e-38, %v1896_v28 }
 0x4cf   : > { %v1889_v47 = vadd.f32 %v2557_v24, %v1888_v55  ;;  %v2565_v13 = vpop.eup %2564  ;;  %v1919_v20 = vadd.f32 %v2559_v51, %v1918_v21  ;;  %vm1920_vm9 = vweird.f32 %v3665_v14  ;;  %2570 = vrcp.f32 %v3728_v19 }
 0x4d0   : > { %v2567_v11 = vpop.eup %2566  ;;  %v2086_v22 = vpack.c.bf16 %v2076_v61, %v2074_v39  ;;  %vm1922_vm10 = vmor %vm1920_vm9, %vm1921_vm0  ;;  %v1927_v23 = vor.u32 1.1754944e-38, %v1926_v49  ;;  %v1732_v10 = vmul.f32 %v1716_v40, %v1429_v58  ;;  %vm1925_vm3 = vcmp.eq.f32.partialorder %v1924_v18, 8.507059e+37 }
 0x4d1   : > { %v1893_v30 = vsel %vm1892_vm8, %v2557_v24, %v1889_v47  ;;  %v1923_v35 = vsel %vm1922_vm10, %v2559_v51, %v1919_v20  ;;  %v3747_v0 = vadd.f32 %v1730_v25, %v1443_v12  ;;  %v3751_v37 = vadd.f32 1.0, %v2565_v13 }
 0x4d2   : > { %v1898_v50 = vsel %vm1895_vm2, %v1897_v41, %v1893_v30  ;;  %2115 = vmatpush.bf16.msrb.mxu3 %v2086_v22  ;;  %v1928_v14 = vsel %vm1925_vm3, %v1927_v23, %v1923_v35  ;;  %v3753_v48 = vadd.f32 1.0, %v2567_v11  ;;  %v3755_v62 = vadd.f32 %v1732_v10, %v1445_v60 }
 0x4d3   : > { %v2069_v56 = vmul.f32 %v1898_v50, %v3514_v7  ;;  %v2071_v17 = vmul.f32 %v1928_v14, %v3526_v6  ;;  %2572 = vrcp.f32 %v3751_v37  ;;  %v2388_v4 = vmul.f32 -1.442695, %v3747_v0 }
 0x4d4   : > { %v2569_v63 = vpop.eup %2568  ;;  %v1909_v6 = vand.u32 2147483647, %v3724_v57  ;;  %2574 = vrcp.f32 %v3753_v48  ;;  %v1911_v16 = vand.u32 2147483648, %v3724_v57  ;;  %v1939_v28 = vand.u32 2147483647, %v3728_v19 }
 0x4d5   : > { %v2571_v44 = vpop.eup %2570  ;;  %v2083_v54 = vpack.c.bf16 %v2071_v17, %v2069_v56  ;;  %v1901_v53 = vmul.f32 %v2569_v63, %v3724_v57  ;;  %v1941_v18 = vand.u32 2147483648, %v3728_v19  ;;  %vm1906_vm11 = vweird.f32 %v2569_v63 }
 0x4d6   : > { %v1931_v42 = vmul.f32 %v2571_v44, %v3728_v19  ;;  %2576 = vpow2.f32 %v2388_v4  ;;  %v2390_v51 = vmul.f32 -1.442695, %v3755_v62  ;;  %vm1936_vm12 = vweird.f32 %v2571_v44 }
 0x4d7   : > { %2103 = vmatpush.bf16.msrb.mxu2 %v2083_v54  ;;  %v1902_v7 = vsub.f32 1.0, %v1901_v53  ;;  %vm1905_vm13 = vweird.f32 %v3724_v57  ;;  %vm1935_vm15 = vweird.f32 %v3728_v19  ;;  %vm1910_vm4 = vcmp.eq.f32.partialorder %v1909_v6, 8.507059e+37 }
 0x4d8   : > { %v1932_v24 = vsub.f32 1.0, %v1931_v42  ;;  %2578 = vpow2.f32 %v2390_v51  ;;  %vm1907_vm1 = vmor %vm1905_vm13, %vm1906_vm11  ;;  %v1912_v8 = vor.u32 1.1754944e-38, %v1911_v16  ;;  %vm1940_vm6 = vcmp.eq.f32.partialorder %v1939_v28, 8.507059e+37 }
 0x4d9   : > { %v1903_v32 = vmul.f32 %v2569_v63, %v1902_v7  ;;  %v2573_v59 = vpop.eup %2572  ;;  %vm1937_vm5 = vmor %vm1935_vm15, %vm1936_vm12  ;;  %v1942_v49 = vor.u32 1.1754944e-38, %v1941_v18  ;;  %v1834_v29 = vand.u32 2147483647, %v3751_v37  ;;  %v1836_v57 = vand.u32 2147483648, %v3751_v37 }
 0x4da   : > { %v1933_v52 = vmul.f32 %v2571_v44, %v1932_v24  ;;  %v1826_v46 = vmul.f32 %v2573_v59, %v3751_v37  ;;  %v2575_v5 = vpop.eup %2574  ;;  %vm1831_vm7 = vweird.f32 %v2573_v59  ;;  %vm1830_vm14 = vweird.f32 %v3751_v37 }
 0x4db   : > { %v1904_v15 = vadd.f32 %v2569_v63, %v1903_v32  ;;  %v1856_v26 = vmul.f32 %v2575_v5, %v3753_v48  ;;  %vm1861_vm0 = vweird.f32 %v2575_v5  ;;  %v1864_v61 = vand.u32 2147483647, %v3753_v48  ;;  %vm1832_vm2 = vmor %vm1830_vm14, %vm1831_vm7 }
 0x4dc   : > { %v1934_v34 = vadd.f32 %v2571_v44, %v1933_v52  ;;  %v1827_v40 = vsub.f32 1.0, %v1826_v46  ;;  %v2577_v31 = vpop.eup %2576  ;;  %v1866_v47 = vand.u32 2147483648, %v3753_v48  ;;  %v1837_v20 = vor.u32 1.1754944e-38, %v1836_v57 }
 0x4dd   : > { %v1908_v36 = vsel %vm1907_vm1, %v2569_v63, %v1904_v15  ;;  %v1857_v19 = vsub.f32 1.0, %v1856_v26  ;;  %v1810_v58 = vadd.f32 1.0, %v2577_v31  ;;  %vm1860_vm8 = vweird.f32 %v3753_v48  ;;  %v1458_v63 = vld [vmem:[%s3834_s14] sm:$0xf] }
 0x4de   : > { %v1913_v45 = vsel %vm1910_vm4, %v1912_v8, %v1908_v36  ;;  %v1938_v33 = vsel %vm1937_vm5, %v2571_v44, %v1934_v34  ;;  %v1828_v21 = vmul.f32 %v2573_v59, %v1827_v40  ;;  %v2579_v25 = vpop.eup %2578  ;;  %vm1835_vm9 = vcmp.eq.f32.partialorder %v1834_v29, 8.507059e+37  ;;  %vm1862_vm10 = vmor %vm1860_vm8, %vm1861_vm0  ;;  %v2092_v8 = vpop.permute.xlu1 %2091 }
 0x4df   : > { %v1943_v39 = vsel %vm1940_vm6, %v1942_v49, %v1938_v33  ;;  %v2070_v55 = vmul.f32 %v1913_v45, %v3570_v9  ;;  %v1858_v41 = vmul.f32 %v2575_v5, %v1857_v19  ;;  %v1812_v9 = vadd.f32 1.0, %v2579_v25 }
 0x4e0   : > { %v2072_v2 = vmul.f32 %v1943_v39, %v3576_v3  ;;  %v1829_v13 = vadd.f32 %v2573_v59, %v1828_v21  ;;  %2580 = vrcp.f32 %v1810_v58  ;;  %v1867_v30 = vor.u32 1.1754944e-38, %v1866_v47 }
 0x4e1   : > { %v1859_v11 = vadd.f32 %v2575_v5, %v1858_v41  ;;  %2582 = vrcp.f32 %v1812_v9  ;;  %vm1865_vm3 = vcmp.eq.f32.partialorder %v1864_v61, 8.507059e+37  ;;  %v1851_v44 = vand.u32 2147483648, %v1810_v58  ;;  %v2160_v41 = vld [vmem:[%s3836_s16] sm:$0x3] }
 0x4e2   : > { %v2084_v12 = vpack.c.bf16 %v2072_v2, %v2070_v55  ;;  %v1833_v3 = vsel %vm1832_vm2, %v2573_v59, %v1829_v13  ;;  %v1849_v4 = vand.u32 2147483647, %v1810_v58  ;;  %vm3888_vm13 = vcmask 523264  }
 0x4e3   : > { %v1838_v22 = vsel %vm1835_vm9, %v1837_v20, %v1833_v3  ;;  %v1863_v23 = vsel %vm1862_vm10, %v2575_v5, %v1859_v11  ;;  %vm1845_vm15 = vweird.f32 %v1810_v58  ;;  %v1852_v6 = vor.u32 1.1754944e-38, %v1851_v44  ;;  %vm3889_vm14 = vmmov %vm3888_vm13  ;;  %v2130_v11 = vld [vmem:[%s3794_s22 + $0x8] sm:$0xff] }
 0x4e4   : > { %2116 = vmatpush.bf16.msrb.mxu3 %v2084_v12  ;;  %v2065_v10 = vmul.f32 %v1838_v22, %v3682_v38  ;;  %v1868_v50 = vsel %vm1865_vm3, %v1867_v30, %v1863_v23  ;;  %v1881_v38 = vand.u32 2147483648, %v1812_v9  ;;  %vm1875_vm4 = vweird.f32 %v1812_v9 }
 0x4e5   : > { %v2067_v35 = vmul.f32 %v1868_v50, %v3696_v1  ;;  %v1879_v1 = vand.u32 2147483647, %v1812_v9  ;;  %vm1850_vm5 = vcmp.eq.f32.partialorder %v1849_v4, 8.507059e+37  ;;  %vm3891_vm0 = vcmask 1043456   ;;  %v2167_v4 = vpop.permute.xlu2 %2166 }
 0x4e6   : > { %v2581_v60 = vpop.eup %2580  ;;  %v1882_v28 = vor.u32 1.1754944e-38, %v1881_v38  ;;  %v1378_v45 = vpop.permute.xlu1 %1377  ;;  %vm3892_vm2 = vcmask 64512   ;;  %vm3893_vm8 = vmmov %vm3891_vm0  ;;  %vm3896_vm10 = vcmask 1041408   ;;  %vm2158_vm3 = vcmask 0  }
 0x4e7   : > { %v2583_v14 = vpop.eup %2582  ;;  %v2081_v56 = vpack.c.bf16 %v2067_v35, %v2065_v10  ;;  %v1841_v17 = vmul.f32 %v2581_v60, %v1810_v58  ;;  %vm1846_vm11 = vweird.f32 %v2581_v60  ;;  %vm1880_vm7 = vcmp.eq.f32.partialorder %v1879_v1, 8.507059e+37  ;;  %vm3894_vm9 = vmmov %vm3892_vm2 }
 0x4e8   : > { %v1871_v37 = vmul.f32 %v2583_v14, %v1812_v9  ;;  %vm1876_vm12 = vweird.f32 %v2583_v14  ;;  %vm1847_vm1 = vmor %vm1845_vm15, %vm1846_vm11  ;;  %v1394_v40 = vadd.f32 %v3306_v27, %v1378_v45  ;;  %v1407_v2 = vadd.f32 %v3308_v43, %v1378_v45 }
 0x4e9   : > { %2104 = vmatpush.bf16.msrb.mxu2 %v2081_v56  ;;  %v1842_v48 = vsub.f32 1.0, %v1841_v17  ;;  %vm1877_vm6 = vmor %vm1875_vm4, %vm1876_vm12 }
 0x4ea   : > { %v1872_v54 = vsub.f32 1.0, %v1871_v37  ;;  %v2137_v25 = vmul.f32 %v1394_v40, %v1394_v40  ;;  %v2138_v27 = vmul.f32 %v1407_v2, %v1407_v2 }
 0x4eb   : > { %v1843_v53 = vmul.f32 %v2581_v60, %v1842_v48 }
 0x4ec   : > { %v1873_v42 = vmul.f32 %v2583_v14, %v1872_v54  ;;  %2403 = vmatmul.msk.bf16.vlgmr.msrb.gmra.mxu2 %vm3888_vm13, %v1458_v63 }
 0x4ed   : > { %v1844_v7 = vadd.f32 %v2581_v60, %v1843_v53 }
 0x4ee   : > { %v1874_v16 = vadd.f32 %v2583_v14, %v1873_v42 }
 0x4ef   : > { %v1848_v24 = vsel %vm1847_vm1, %v2581_v60, %v1844_v7 }
 0x4f0   : > { %v1853_v18 = vsel %vm1850_vm5, %v1852_v6, %v1848_v24  ;;  %v1878_v32 = vsel %vm1877_vm6, %v2583_v14, %v1874_v16 }
 0x4f1   : > { %v1883_v51 = vsel %vm1880_vm7, %v1882_v28, %v1878_v32  ;;  %v2066_v52 = vmul.f32 %v1853_v18, %v3747_v0 }
 0x4f2   : > { %v2068_v59 = vmul.f32 %v1883_v51, %v3755_v62  ;;  %v2129_v62 = vld [vmem:[%s3794_s22] sm:$0xff] }
 0x4f4   : > { %v2082_v15 = vpack.c.bf16 %v2068_v59, %v2066_v52 }
 0x4f6   : > { %2117 = vmatpush.bf16.msrb.mxu3 %v2082_v15 }
 0x4f9   : > { %2404 = vmatmul.msk.bf16.vlgmr.msrb.gmra.mxu3 %vm3889_vm14, %v1458_v63 }
 0x56f   : > { %v2106_v34 = vpop.f32.mrf.mxu2 }
 0x570   : > { %v2107_v46 = vadd.f32 %v2106_v34, %v2092_v8 }
 0x572   : > { %v2123_v5 = vmul.f32 0.5, %v2107_v46  ;;  %v2141_v49 = vmul.f32 1.442695, %v2107_v46  ;;  %v2135_v21 = vadd.f32 1.0, %v2107_v46 }
 0x574   : > { %v2125_v36 = vmul.f32 1.442695, %v2123_v5  ;;  %v2139_v13 = vsub.f32 %v2135_v21, %v2137_v25 }
 0x576   : > { %2584 = vpow2.f32 %v2125_v36 }
 0x577   : > { %v2108_v0 = vpop.f32.mrf.mxu2  ;;  %2586 = vpow2.f32 %v2141_v49 }
 0x57c   : > { %v2585_v29 = vpop.eup %2584  ;;  %v2119_v33 = vpop.f32.mrf.mxu3 }
 0x57d   : > { %v2120_v26 = vadd.f32 %v2119_v33, %v2092_v8  ;;  %v2131_v31 = vmul.f32 %v2585_v29, %v2129_v62  ;;  %v2587_v47 = vpop.eup %2586 }
 0x57e   : > { %v2145_v20 = vsub.f32 %v2139_v13, %v2587_v47 }
 0x57f   : > { %v2124_v39 = vmul.f32 0.5, %v2120_v26  ;;  %v2143_v55 = vmul.f32 1.442695, %v2120_v26  ;;  %v2133_v57 = vadd.f32 %v2131_v31, %v1394_v40  ;;  %v2136_v61 = vadd.f32 1.0, %v2120_v26 }
 0x581   : > { %v2127_v19 = vmul.f32 1.442695, %v2124_v39  ;;  %2588 = vpow2.f32 %v2143_v55  ;;  %v2161_v58 = vpack.c.bf16 %v2133_v57, %v2133_v57  ;;  %v2140_v43 = vsub.f32 %v2136_v61, %v2138_v27 }
 0x583   : > { %2590 = vpow2.f32 %v2127_v19  ;;  %v2173_v12 = vsel %vm3891_vm0, %v2161_v58, 0 }
 0x584   : > { %2185 = vmatpush.bf16.msra.mxu2 %v2173_v12  ;;  %v2121_v9 = vpop.f32.mrf.mxu3 }
 0x587   : > { %v2589_v3 = vpop.eup %2588  ;;  %2405 = vmatmul.msk.bf16.vlgmr.msra.gmra.mxu2 %vm3892_vm2, %v2160_v41 }
 0x588   : > { %v2146_v22 = vsub.f32 %v2140_v43, %v2589_v3 }
 0x589   : > { %v2591_v30 = vpop.eup %2590 }
 0x58a   : > { %v2147_v23 = vadd.f32 %v2146_v22, %v2145_v20  ;;  %v2132_v10 = vmul.f32 %v2591_v30, %v2130_v11 }
 0x58c   : > { %2148 = vadd.xlane.f32.xlu1 %v2147_v23  ;;  %v2134_v50 = vadd.f32 %v2132_v10, %v1407_v2 }
 0x58e   : > { %v2162_v35 = vpack.c.bf16 %v2134_v50, %v2134_v50 }
 0x590   : > { %v2176_v60 = vsel %vm3893_vm8, %v2162_v35, 0 }
 0x591   : > { %2198 = vmatpush.bf16.msra.mxu3 %v2176_v60 }
 0x594   : > { %2406 = vmatmul.msk.bf16.vlgmr.msra.gmra.mxu3 %vm3894_vm9, %v2160_v41 }
 0x5ff   : > { %v2149_v14 = vpop.xlane.xlu1 %2148 }
 0x600   : > { %v2150_v56 = vrot.slane %v2149_v14, 4 }
 0x602   : > { %v2151_v17 = vadd.f32 %v2150_v56, %v2149_v14 }
 0x604   : > { %v2152_v37 = vrot.slane %v2151_v17, 2 }
 0x606   : > { %v2153_v48 = vadd.f32 %v2152_v37, %v2151_v17 }
 0x608   : > { %v2154_v63 = vrot.slane %v2153_v48, 1 }
 0x60a   : > { %v2155_v44 = vadd.f32 %v2154_v63, %v2153_v48  ;;  %v2187_v54 = vpop.f32.mrf.mxu2 }
 0x60b   : > { %v2188_v38 = vadd.f32 %v2187_v54, %v2167_v4 }
 0x60c   : > { %2435 = vpush %v2155_v44 }
 0x612   : > { %v2189_v53 = vpop.f32.mrf.mxu2 }
 0x617   : > { %v2200_v42 = vpop.f32.mrf.mxu3 }
 0x618   : > { %v2201_v1 = vadd.f32 %v2200_v42, %v2167_v4 }
 0x61a   : > { %v2204_v7 = vpack.c.bf16 %v2201_v1, %v2188_v38 }
 0x61c   : > { %v2206_v6 = vrot.slane %v2204_v7, 2 }
 0x61e   : > { %v2209_v16 = vsel %vm3896_vm10, %v2204_v7, %v2206_v6 }
 0x61f   : > { %2211 = vst [vmem:[%s628_s27] sm:$0xf] %v2209_v16  ;;  %v2202_v24 = vpop.f32.mrf.mxu3 }
 0x63d   : > { %s2436_s1 = spop %2435 }
 0x63e   : > { %v2157_v28 = vstv %s2436_s1 }
 0x63f   : > { %2159 = vst.msk [vmem:[%s631_s20] sm:$0x1] %vm2158_vm3, %v2157_v28 }
 0x640 PF: > { %s30_s0 = sadd.s32 1, %s2598_s0  }
 0x641   : > { %p27_p4 = scmp.ge.s32.totalorder %s30_s0, 4  }
 0x643   :  { %29 = sbr.rel (!%p27_p4) target bundleno = 5 (0x5), region = 137 }

// kernel: variational_clp_forward.7
= control target key start
LH: loop header
LB: loop body
LE: loop exit
PB: predicated region body
PF: predicated region fallthrough
CT: control target
= control target key end

     0   :  { %s381_s12 = smov 0   ;;  %s408_s0 = inlined_call_operand.vmem [shape: bf16[2,36,256], index: 0, kind: input, shape index: {}]   ;;  %s409_s1 = inlined_call_operand.vmem [shape: bf16[4,36], index: 1, kind: input, shape index: {}]   ;;  %s410_s2 = inlined_call_operand.vmem [shape: f32[4,1], index: 2, kind: input, shape index: {}]   ;;  %s411_s3 = inlined_call_operand.vmem [shape: f32[2,4,256], index: 3, kind: output, shape index: {}]  }
   0x1 LB: > { %s308_s13 = sadd.s32 4294967295, %s358_s12   ;;  %p312_p0 = scmp.ge.s32.totalorder %s358_s12, 1  ;;  %s358_s12 = sphi %s381_s12, %s13_s12  }
   0x2   : > { %p137_p1 = scmp.lt.s32.totalorder %s358_s12, 3 }
   0x4   : > { %p138_p2 = pnand %p312_p0, %p137_p1 }
   0x5   : > { %p161_p3 = scmp.lt.s32.totalorder (!%p138_p2), %s308_s13, 1 }
   0x6   : > { %141 = sbr.rel (%p138_p2) target bundleno = 166 (0xa6), region = 32 }
   0xb   : > { %v360_v0 = vmov 0   ;;  %v178_v1 = vld [vmem:[%s410_s2] sm:$0xf]  ;;  %s413_s13 = smov (!%p161_p3, %s308_s13), 1  ;;  %vm213_vm0 = vcmask 1041408   ;;  %vm209_vm1 = vcmask 293888  }
   0xc   : > { %351 = vset.pattern.permute.xlu0 %v360_v0  ;;  %s341_s16 = smul.u32 40, %s413_s13  ;;  %v172_v21 = vld [vmem:[%s409_s1] sm:$0x3]  ;;  %s336_s22 = sshll.u32 %s413_s13, 3  ;;  %vm249_vm2 = vcmask 1043456  }
   0xd   : > { %181 = vperm.xlu0 %351, %v178_v1   ;;  %s170_s25 = scalar_lea.vmem %s411_s3, %s336_s22 }
   0xe   : > { %s165_s19 = scalar_lea.vmem %s408_s0, %s341_s16 }
   0xf   : > { %v177_v2 = vld [vmem:[%s165_s19 + $0x20] sm:$0x33]  ;;  %v326_v5 = vld [vmem:[%s165_s19 + $0x10] sm:$0xf]  ;;  %v340_v8 = vld [vmem:[%s165_s19 + $0x14] sm:$0xf0] }
  0x10   : > { %v197_v3 = vunpack.c.l.b16 %v177_v2  ;;  %v198_v4 = vunpack.c.h.b16 %v177_v2  ;;  %v339_v9 = vld [vmem:[%s165_s19 + $0x14] sm:$0xf]  ;;  %v328_v10 = vld [vmem:[%s165_s19 + $0x18] sm:$0xf0]  ;;  %v327_v13 = vor.u32 %v340_v8, %v326_v5  ;;  %v318_v15 = vld [vmem:[%s165_s19] sm:$0xf] }
  0x11   : > { %v331_v14 = vor.u32 %v339_v9, %v328_v10  ;;  %v338_v16 = vld [vmem:[%s165_s19 + $0x4] sm:$0xf0]  ;;  %v337_v17 = vld [vmem:[%s165_s19 + $0x4] sm:$0xf]  ;;  %v320_v18 = vld [vmem:[%s165_s19 + $0x8] sm:$0xf0] }
  0x12   : > { %v203_v6 = vpack.c.b16 %v197_v3, %v197_v3  ;;  %v204_v7 = vpack.c.b16 %v198_v4, %v198_v4  ;;  %v319_v19 = vor.u32 %v338_v16, %v318_v15  ;;  %v323_v20 = vor.u32 %v337_v17, %v320_v18 }
  0x14   : > { %v215_v11 = vsel %vm213_vm0, %v203_v6, 0  ;;  %v218_v12 = vsel %vm213_vm0, %v204_v7, 0 }
  0x15   : > { %225 = vmatpush.bf16.msra.mxu0 %v215_v11  ;;  %238 = vmatpush.bf16.msra.mxu1 %v218_v12 }
  0x19   : > { %226 = vmatpush.bf16.msra.mxu0 %v327_v13  ;;  %239 = vmatpush.bf16.msra.mxu1 %v331_v14 }
  0x1d   : > { %227 = vmatpush.bf16.msra.mxu0 %v319_v19  ;;  %240 = vmatpush.bf16.msra.mxu1 %v323_v20 }
  0x20   : > { %332 = vmatmul.msk.bf16.vlgmr.msra.gmra.mxu0 %vm209_vm1, %v172_v21  ;;  %333 = vmatmul.msk.bf16.vlgmr.msra.gmra.mxu1 %vm209_vm1, %v172_v21 }
  0x7f   : > { %v182_v22 = vpop.permute.xlu0 %181 }
  0x9d   : > { %v229_v23 = vpop.f32.mrf.mxu0  ;;  %v242_v24 = vpop.f32.mrf.mxu1 }
  0x9e   : > { %v243_v25 = vadd.f32 %v242_v24, %v182_v22  ;;  %v230_v26 = vadd.f32 %v229_v23, %v182_v22 }
  0xa0   : > { %v248_v27 = vrot.slane %v243_v25, 4 }
  0xa2   : > { %v250_v28 = vsel %vm249_vm2, %v230_v26, %v248_v27 }
  0xa3   : > { %252 = vst [vmem:[%s170_s25] sm:$0xff] %v250_v28 }
  0xa5   : > { %v231_v29 = vpop.f32.mrf.mxu0  ;;  %v244_v30 = vpop.f32.mrf.mxu1 }
  0xa6 PF: > { %s13_s12 = sadd.s32 1, %s358_s12  }
  0xa7   : > { %p10_p4 = scmp.ge.s32.totalorder %s13_s12, 4  }
  0xa9   :  { %12 = sbr.rel (!%p10_p4) target bundleno = 1 (0x1), region = 62 }

</bundles_post_ra>
